<compile_context>
chip_gen: v7x
topology: tpu7x:2x2x1
jax: 0.10.0
libtpu: 0.0.40
codegen_flags: <defaults>
</compile_context>

<pallas_src>
import functools

import jax
import jax.numpy as jnp
from jax.experimental import pallas as pl
from jax.experimental.pallas import tpu as pltpu

# ---- hyperparameters (match the PyTorch module) ----
TRANSFORMER_N_MFCC = 4
IN_DIM = TRANSFORMER_N_MFCC * 3 + 1      # 13
D_MODEL = 32
NHEAD = 4
HEAD_DIM = D_MODEL // NHEAD              # 8
DIM_FF = 128
NUM_LAYERS = 2
N_CLASSES = 2
LN_EPS = 1e-5

SLAB_COLS = 128                          # lane width of the packed param slabs
MASK_NEG = -1e30                         # additive bias for off-diagonal blocks


def _round_up(x, m):
    return (x + m - 1) // m * m


def _layernorm(x, g, b):
    mu = jnp.mean(x, axis=-1, keepdims=True)
    var = jnp.mean((x - mu) ** 2, axis=-1, keepdims=True)
    return (x - mu) * jax.lax.rsqrt(var + LN_EPS) * g + b


def _mxu(a, b):
    # bf16 inputs (native MXU width), f32 accumulation.  Weight operands are
    # already bf16 in the slab, so their astype is a no-op.
    return jnp.dot(a.astype(jnp.bfloat16), b.astype(jnp.bfloat16),
                   preferred_element_type=jnp.float32)


def audio_transformer_kernel(x_ref, mask_ref, wslab_ref, bslab_ref, o_ref, *,
                             woffs, boffs, tb, seq):
    def W(name):                                   # bf16 weight block
        r0, nr, nc = woffs[name]
        return wslab_ref[r0:r0 + nr, 0:nc]

    def Bv(name):                                  # f32 bias / LN block
        r0, nr, nc = boffs[name]
        return bslab_ref[r0:r0 + nr, 0:nc]

    bs = tb * seq
    x = x_ref[...].reshape(bs, IN_DIM)             # (TB*S, 13)
    mask_bias = mask_ref[...]                      # (bs, bs) 0 / -1e30

    # embedding: Linear(13 -> 32) over all TB*S rows at once
    h = _mxu(x, W("emb_w")) + Bv("emb_b")          # (TB*S, 32)

    for l in range(NUM_LAYERS):
        # ---- multi-head self attention (post-norm encoder layer) ----
        # Q columns/bias already carry 1/sqrt(head_dim) (folded at pack time).
        qkv = _mxu(h, W(f"qkv_w{l}")) + Bv(f"qkv_b{l}")        # (bs, 96)
        q = qkv[:, 0:D_MODEL]                                   # 32-lane slices
        k = qkv[:, D_MODEL:2 * D_MODEL]
        v = qkv[:, 2 * D_MODEL:3 * D_MODEL]
        out_w = W(f"out_w{l}")                                  # (32, 32)

        attn = jnp.zeros((bs, D_MODEL), jnp.float32)
        for hd in range(NHEAD):
            lo = hd * HEAD_DIM
            qh = q[:, lo:lo + HEAD_DIM]                         # (bs, 8)
            kh = k[:, lo:lo + HEAD_DIM]
            vh = v[:, lo:lo + HEAD_DIM]

            # dense flattened scores; off-diagonal (cross-example) blocks are
            # masked to -1e30 so the row softmax equals per-example softmax.
            s = jnp.einsum("qd,kd->qk",
                           qh.astype(jnp.bfloat16), kh.astype(jnp.bfloat16),
                           preferred_element_type=jnp.float32)  # (bs, bs)
            s = s + mask_bias
            s = s - jnp.max(s, axis=-1, keepdims=True)
            p = jnp.exp(s)
            p = p * pl.reciprocal(jnp.sum(p, axis=-1, keepdims=True),
                                  approx=True)
            oh = _mxu(p, vh)                                    # (bs, 8)

            # concat-free out projection: concat(heads) @ W == sum_h head_h @ W[h rows]
            attn = attn + _mxu(oh, out_w[lo:lo + HEAD_DIM, :])

        attn = attn + Bv(f"out_b{l}")
        h = _layernorm(h + attn, Bv(f"ln1_g{l}"), Bv(f"ln1_b{l}"))

        # ---- feed-forward: Linear(32->128), ReLU, Linear(128->32) ----
        f = _mxu(h, W(f"ff1_w{l}")) + Bv(f"ff1_b{l}")
        f = jnp.maximum(f, 0.0)
        f = _mxu(f, W(f"ff2_w{l}")) + Bv(f"ff2_b{l}")
        h = _layernorm(h + f, Bv(f"ln2_g{l}"), Bv(f"ln2_b{l}"))

    # mean over sequence, then fc_out: Linear(32 -> 2); one (TB, 2) store.
    pooled = jnp.mean(h.reshape(tb, seq, D_MODEL), axis=1)      # (TB, 32)
    o_ref[0] = _mxu(pooled, W("fc_w")) + Bv("fc_b")             # (TB, 2)


def _pack_slab(entries, dtype, row_align):
    """Pack 2-D blocks into one (rows, 128) slab; row offsets aligned."""
    offsets = {}
    blocks = []
    row = 0
    for name, arr in entries:
        r, c = arr.shape
        offsets[name] = (row, r, c)
        rp = _round_up(r, row_align)
        block = jnp.zeros((rp, SLAB_COLS), dtype)
        block = block.at[:r, :c].set(arr.astype(dtype))
        blocks.append(block)
        row += rp
    return jnp.concatenate(blocks, axis=0), offsets


def _pack_params(params):
    """bf16 slab for matmul weights, f32 slab for biases / LayerNorm params.
    Folds the 1/sqrt(head_dim) attention scale into the Q in-proj columns."""
    (emb_w, emb_b, qkv_w, qkv_b, out_w, out_b,
     ln1_g, ln1_b, ff1_w, ff1_b, ff2_w, ff2_b,
     ln2_g, ln2_b, fc_w, fc_b) = params

    scale = 1.0 / (HEAD_DIM ** 0.5)
    qkv_w = qkv_w.at[:, :, :D_MODEL].multiply(scale)
    qkv_b = qkv_b.at[:, :, :D_MODEL].multiply(scale)

    w_entries = [("emb_w", emb_w)]
    b_entries = [("emb_b", emb_b)]
    for l in range(NUM_LAYERS):
        w_entries += [(f"qkv_w{l}", qkv_w[l]), (f"out_w{l}", out_w[l]),
                      (f"ff1_w{l}", ff1_w[l]), (f"ff2_w{l}", ff2_w[l])]
        b_entries += [(f"qkv_b{l}", qkv_b[l]), (f"out_b{l}", out_b[l]),
                      (f"ln1_g{l}", ln1_g[l]), (f"ln1_b{l}", ln1_b[l]),
                      (f"ff1_b{l}", ff1_b[l]), (f"ff2_b{l}", ff2_b[l]),
                      (f"ln2_g{l}", ln2_g[l]), (f"ln2_b{l}", ln2_b[l])]
    w_entries += [("fc_w", fc_w)]
    b_entries += [("fc_b", fc_b)]

    wslab, woffs = _pack_slab(w_entries, jnp.bfloat16, 16)   # bf16 sublane tile
    bslab, boffs = _pack_slab(b_entries, jnp.float32, 8)
    return wslab, woffs, bslab, boffs


def _choose_block_batch(B, S, target_rows):
    # ~target_rows flattened rows per grid step; no forced >=2 tiles
    # (v5e / v6e have a single TensorCore, the grid is a serial loop there).
    tb = max(1, target_rows // max(S, 1))
    return min(tb, B)


def audio_transformer(x, params, *, block_batch=None, target_rows=256,
                      min_tiles=1):
    """min_tiles=2 is recommended on v7x (2 TensorCores); target_rows is the
    sweepable flattened-row tile size (dense-score waste factor == tb)."""
    B, S, F = x.shape
    assert F == IN_DIM, (F, IN_DIM)

    wslab, woffs, bslab, boffs = _pack_params(params)

    tb = _choose_block_batch(B, S, target_rows) if block_batch is None \
        else min(block_batch, B)
    if min_tiles > 1:
        tb = min(tb, max(1, pl.cdiv(B, min_tiles)))
    num_tiles = pl.cdiv(B, tb)
    if min_tiles > 1:
        num_tiles = _round_up(num_tiles, min_tiles)   # balanced work per TC
    b_pad = num_tiles * tb
    if b_pad != B:
        x = jnp.pad(x, ((0, b_pad - B), (0, 0), (0, 0)))

    # Block-diagonal additive mask over the flattened (tb*S) axis: rows/cols in
    # the same batch element get 0, cross-element pairs get -1e30 (host-built,
    # grid-invariant).
    bs = tb * S
    ids = jnp.repeat(jnp.arange(tb, dtype=jnp.int32), S)
    mask_bias = jnp.where(ids[:, None] == ids[None, :],
                          jnp.float32(0.0), jnp.float32(MASK_NEG))

    kernel = functools.partial(audio_transformer_kernel,
                               woffs=woffs, boffs=boffs, tb=tb, seq=S)

    out = pl.pallas_call(
        kernel,
        out_shape=jax.ShapeDtypeStruct((num_tiles, tb, N_CLASSES), jnp.float32),
        grid_spec=pltpu.PrefetchScalarGridSpec(
            num_scalar_prefetch=0,
            grid=(num_tiles,),
            in_specs=[
                pl.BlockSpec((tb, S, IN_DIM), lambda b: (b, 0, 0)),
                pl.BlockSpec((bs, bs), lambda b: (0, 0)),
                pl.BlockSpec(wslab.shape, lambda b: (0, 0)),
                pl.BlockSpec(bslab.shape, lambda b: (0, 0)),
            ],
            out_specs=pl.BlockSpec((1, tb, N_CLASSES), lambda b: (b, 0, 0)),
        ),
        compiler_params=pltpu.CompilerParams(
            dimension_semantics=("parallel",)),
    )(x, mask_bias, wslab, bslab)
    return out.reshape(b_pad, N_CLASSES)[:B]


def audio_transformer_ref(x, params):
    """Pure-JAX f32 reference (exact softmax) matching the PyTorch forward."""
    (emb_w, emb_b, qkv_w, qkv_b, out_w, out_b,
     ln1_g, ln1_b, ff1_w, ff1_b, ff2_w, ff2_b,
     ln2_g, ln2_b, fc_w, fc_b) = params
    B, S, _ = x.shape
    h = x @ emb_w + emb_b
    for l in range(NUM_LAYERS):
        qkv = h @ qkv_w[l] + qkv_b[l]
        q = qkv[..., 0:D_MODEL].reshape(B, S, NHEAD, HEAD_DIM)
        k = qkv[..., D_MODEL:2 * D_MODEL].reshape(B, S, NHEAD, HEAD_DIM)
        v = qkv[..., 2 * D_MODEL:].reshape(B, S, NHEAD, HEAD_DIM)
        s = jnp.einsum("bqhd,bkhd->bhqk", q, k) / (HEAD_DIM ** 0.5)
        p = jax.nn.softmax(s, axis=-1)
        o = jnp.einsum("bhqk,bkhd->bqhd", p, v).reshape(B, S, D_MODEL)
        attn = o @ out_w[l] + out_b[l]
        h = _layernorm(h + attn, ln1_g[l], ln1_b[l])
        f = jnp.maximum(h @ ff1_w[l] + ff1_b[l], 0.0)
        f = f @ ff2_w[l] + ff2_b[l]
        h = _layernorm(h + f, ln2_g[l], ln2_b[l])
    pooled = h.mean(axis=1)
    return pooled @ fc_w + fc_b


def init_params(key):
    """Deterministic synthetic parameters matching the PyTorch module's shapes
    (weights stored pre-transposed as (in, out) so the kernel does x @ W;
    in_proj columns ordered [q | k | v])."""
    ks = jax.random.split(key, 16)
    L, D, FF = NUM_LAYERS, D_MODEL, DIM_FF
    n = lambda k, shape, s=0.05: (s * jax.random.normal(k, shape)).astype(jnp.float32)

    emb_w = n(ks[0], (IN_DIM, D))
    emb_b = n(ks[1], (1, D), 0.02)
    qkv_w = n(ks[2], (L, D, 3 * D))          # MHA in_proj, columns = [q | k | v]
    qkv_b = n(ks[3], (L, 1, 3 * D), 0.02)
    out_w = n(ks[4], (L, D, D))              # MHA out_proj
    out_b = n(ks[5], (L, 1, D), 0.02)
    ln1_g = jnp.ones((L, 1, D), jnp.float32)
    ln1_b = jnp.zeros((L, 1, D), jnp.float32)
    ff1_w = n(ks[6], (L, D, FF))
    ff1_b = n(ks[7], (L, 1, FF), 0.02)
    ff2_w = n(ks[8], (L, FF, D))
    ff2_b = n(ks[9], (L, 1, D), 0.02)
    ln2_g = jnp.ones((L, 1, D), jnp.float32)
    ln2_b = jnp.zeros((L, 1, D), jnp.float32)
    fc_w = n(ks[10], (D, N_CLASSES))
    fc_b = n(ks[11], (1, N_CLASSES), 0.02)

    return (emb_w, emb_b, qkv_w, qkv_b, out_w, out_b,
            ln1_g, ln1_b, ff1_w, ff1_b, ff2_w, ff2_b,
            ln2_g, ln2_b, fc_w, fc_b)


if __name__ == "__main__":
    key = jax.random.PRNGKey(0)
    kx, kp, kx2 = jax.random.split(key, 3)
    params = init_params(kp)

    # small spec-scale example (single grid step, bs = 16)
    B, S = 2, 8
    x = jax.random.normal(kx, (B, S, IN_DIM), dtype=jnp.float32)
    logits = jax.block_until_ready(audio_transformer(x, params))
    assert logits.shape == (B, N_CLASSES), logits.shape
    assert bool(jnp.all(jnp.isfinite(logits)))
    ref = audio_transformer_ref(x, params)
    assert bool(jnp.allclose(logits, ref, atol=5e-2, rtol=5e-2)), (logits, ref)

    # batched path: tb=32 -> 256 lane-dense flattened rows, 2 grid steps,
    # padded batch tail (48 -> 64) exercised.
    B2 = 48
    x2 = jax.random.normal(kx2, (B2, S, IN_DIM), dtype=jnp.float32)
    logits2 = jax.block_until_ready(audio_transformer(x2, params))
    assert logits2.shape == (B2, N_CLASSES), logits2.shape
    assert bool(jnp.all(jnp.isfinite(logits2)))
    ref2 = audio_transformer_ref(x2, params)
    assert bool(jnp.allclose(logits2, ref2, atol=5e-2, rtol=5e-2)), (logits2, ref2)

    print("KERNEL_OK")
</pallas_src>

<mosaic_0001>
module attributes {stable_mosaic.version = 11 : i64} {
  func.func @audio_transformer_kernel(%arg0: i32, %arg1: memref<2x8x13xf32, #tpu.memory_space<vmem>>, %arg2: memref<16x16xf32, #tpu.memory_space<vmem>>, %arg3: memref<496x128xbf16, #tpu.memory_space<vmem>>, %arg4: memref<144x128xf32, #tpu.memory_space<vmem>>, %arg5: memref<1x2x2xf32, #tpu.memory_space<vmem>>) attributes {dimension_semantics = [#tpu.dimension_semantics<parallel>], iteration_bounds = array<i64: 1>, scalar_prefetch = 0 : i64, scratch_operands = 0 : i64, tpu.core_type = #tpu.core_type<tc>, window_params = [{transform_indices = @transform_0, window_bounds = array<i64: 2, 8, 13>}, {pipeline_mode = #tpu.pipeline_mode<synchronous>, transform_indices = @transform_1, window_bounds = array<i64: 16, 16>}, {pipeline_mode = #tpu.pipeline_mode<synchronous>, transform_indices = @transform_2, window_bounds = array<i64: 496, 128>}, {pipeline_mode = #tpu.pipeline_mode<synchronous>, transform_indices = @transform_3, window_bounds = array<i64: 144, 128>}, {transform_indices = @transform_4, window_bounds = array<i64: 1, 2, 2>}]} {
    %c0 = arith.constant 0 : index
    %c0_0 = arith.constant 0 : index
    %c0_1 = arith.constant 0 : index
    %0 = vector.load %arg1[%c0, %c0_0, %c0_1] : memref<2x8x13xf32, #tpu.memory_space<vmem>>, vector<2x8x13xf32>
    %1 = vector.shape_cast %0 : vector<2x8x13xf32> to vector<16x13xf32>
    %c0_2 = arith.constant 0 : index
    %c0_3 = arith.constant 0 : index
    %2 = vector.load %arg2[%c0_2, %c0_3] : memref<16x16xf32, #tpu.memory_space<vmem>>, vector<16x16xf32>
    %c0_4 = arith.constant 0 : index
    %c0_5 = arith.constant 0 : index
    %3 = vector.load %arg3[%c0_4, %c0_5] : memref<496x128xbf16, #tpu.memory_space<vmem>>, vector<13x32xbf16>
    %4 = arith.truncf %1 : vector<16x13xf32> to vector<16x13xbf16>
    %cst = arith.constant dense<0.000000e+00> : vector<16x32xf32>
    %5 = tpu.matmul %4, %3, %cst {dimension_numbers = #tpu.dot_dimension_numbers<[1], [0], [0], [1], [0, 0, 1, 1], [], []>} : vector<16x13xbf16>, vector<13x32xbf16>, vector<16x32xf32> -> vector<16x32xf32>
    %c0_6 = arith.constant 0 : index
    %c0_7 = arith.constant 0 : index
    %6 = vector.load %arg4[%c0_6, %c0_7] : memref<144x128xf32, #tpu.memory_space<vmem>>, vector<1x32xf32>
    %7 = vector.broadcast %6 : vector<1x32xf32> to vector<16x32xf32>
    %8 = arith.addf %5, %7 : vector<16x32xf32>
    %c16 = arith.constant 16 : index
    %c0_8 = arith.constant 0 : index
    %9 = vector.load %arg3[%c16, %c0_8] : memref<496x128xbf16, #tpu.memory_space<vmem>>, vector<32x96xbf16>
    %10 = arith.truncf %8 : vector<16x32xf32> to vector<16x32xbf16>
    %cst_9 = arith.constant dense<0.000000e+00> : vector<16x96xf32>
    %11 = tpu.matmul %10, %9, %cst_9 {dimension_numbers = #tpu.dot_dimension_numbers<[1], [0], [0], [1], [0, 0, 1, 1], [], []>} : vector<16x32xbf16>, vector<32x96xbf16>, vector<16x96xf32> -> vector<16x96xf32>
    %c8 = arith.constant 8 : index
    %c0_10 = arith.constant 0 : index
    %12 = vector.load %arg4[%c8, %c0_10] : memref<144x128xf32, #tpu.memory_space<vmem>>, vector<1x96xf32>
    %13 = vector.broadcast %12 : vector<1x96xf32> to vector<16x96xf32>
    %14 = arith.addf %11, %13 : vector<16x96xf32>
    %15 = vector.extract_strided_slice %14 {offsets = [0, 0], sizes = [16, 32], strides = [1, 1]} : vector<16x96xf32> to vector<16x32xf32>
    %16 = vector.extract_strided_slice %14 {offsets = [0, 32], sizes = [16, 32], strides = [1, 1]} : vector<16x96xf32> to vector<16x32xf32>
    %17 = vector.extract_strided_slice %14 {offsets = [0, 64], sizes = [16, 32], strides = [1, 1]} : vector<16x96xf32> to vector<16x32xf32>
    %c48 = arith.constant 48 : index
    %c0_11 = arith.constant 0 : index
    %18 = vector.load %arg3[%c48, %c0_11] : memref<496x128xbf16, #tpu.memory_space<vmem>>, vector<32x32xbf16>
    %cst_12 = arith.constant 0.000000e+00 : f32
    %19 = vector.broadcast %cst_12 : f32 to vector<16x32xf32>
    %20 = vector.extract_strided_slice %15 {offsets = [0, 0], sizes = [16, 8], strides = [1, 1]} : vector<16x32xf32> to vector<16x8xf32>
    %21 = vector.extract_strided_slice %16 {offsets = [0, 0], sizes = [16, 8], strides = [1, 1]} : vector<16x32xf32> to vector<16x8xf32>
    %22 = vector.extract_strided_slice %17 {offsets = [0, 0], sizes = [16, 8], strides = [1, 1]} : vector<16x32xf32> to vector<16x8xf32>
    %23 = arith.truncf %20 : vector<16x8xf32> to vector<16x8xbf16>
    %24 = arith.truncf %21 : vector<16x8xf32> to vector<16x8xbf16>
    "tpu.trace_start"() <{level = 10 : i32, message = "qd,kd->qk"}> : () -> ()
    %cst_13 = arith.constant dense<0.000000e+00> : vector<16x16xf32>
    %25 = tpu.matmul %23, %24, %cst_13 {dimension_numbers = #tpu.dot_dimension_numbers<[1], [1], [0], [0], [0, 0, 1, 0], [], []>} : vector<16x8xbf16>, vector<16x8xbf16>, vector<16x16xf32> -> vector<16x16xf32>
    "tpu.trace_stop"() : () -> ()
    %26 = arith.addf %25, %2 : vector<16x16xf32>
    %cst_14 = arith.constant dense<0xFF800000> : vector<16xf32>
    %27 = vector.multi_reduction <maximumf>, %26, %cst_14 [1] : vector<16x16xf32> to vector<16xf32>
    %28 = vector.shape_cast %27 : vector<16xf32> to vector<16x1xf32>
    %29 = vector.broadcast %28 : vector<16x1xf32> to vector<16x16xf32>
    %30 = arith.subf %26, %29 : vector<16x16xf32>
    %31 = math.exp %30 : vector<16x16xf32>
    %cst_15 = arith.constant dense<0.000000e+00> : vector<16xf32>
    %32 = vector.multi_reduction <add>, %31, %cst_15 [1] : vector<16x16xf32> to vector<16xf32>
    %33 = vector.shape_cast %32 : vector<16xf32> to vector<16x1xf32>
    %34 = tpu.reciprocal %33 {approx = true} : vector<16x1xf32> -> vector<16x1xf32>
    %35 = vector.broadcast %34 : vector<16x1xf32> to vector<16x16xf32>
    %36 = arith.mulf %31, %35 : vector<16x16xf32>
    %37 = arith.truncf %36 : vector<16x16xf32> to vector<16x16xbf16>
    %38 = arith.truncf %22 : vector<16x8xf32> to vector<16x8xbf16>
    %cst_16 = arith.constant dense<0.000000e+00> : vector<16x8xf32>
    %39 = tpu.matmul %37, %38, %cst_16 {dimension_numbers = #tpu.dot_dimension_numbers<[1], [0], [0], [1], [0, 0, 1, 1], [], []>} : vector<16x16xbf16>, vector<16x8xbf16>, vector<16x8xf32> -> vector<16x8xf32>
    %40 = vector.extract_strided_slice %18 {offsets = [0, 0], sizes = [8, 32], strides = [1, 1]} : vector<32x32xbf16> to vector<8x32xbf16>
    %41 = arith.truncf %39 : vector<16x8xf32> to vector<16x8xbf16>
    %cst_17 = arith.constant dense<0.000000e+00> : vector<16x32xf32>
    %42 = tpu.matmul %41, %40, %cst_17 {dimension_numbers = #tpu.dot_dimension_numbers<[1], [0], [0], [1], [0, 0, 1, 1], [], []>} : vector<16x8xbf16>, vector<8x32xbf16>, vector<16x32xf32> -> vector<16x32xf32>
    %43 = arith.addf %19, %42 : vector<16x32xf32>
    %44 = vector.extract_strided_slice %15 {offsets = [0, 8], sizes = [16, 8], strides = [1, 1]} : vector<16x32xf32> to vector<16x8xf32>
    %45 = vector.extract_strided_slice %16 {offsets = [0, 8], sizes = [16, 8], strides = [1, 1]} : vector<16x32xf32> to vector<16x8xf32>
    %46 = vector.extract_strided_slice %17 {offsets = [0, 8], sizes = [16, 8], strides = [1, 1]} : vector<16x32xf32> to vector<16x8xf32>
    %47 = arith.truncf %44 : vector<16x8xf32> to vector<16x8xbf16>
    %48 = arith.truncf %45 : vector<16x8xf32> to vector<16x8xbf16>
    "tpu.trace_start"() <{level = 10 : i32, message = "qd,kd->qk"}> : () -> ()
    %cst_18 = arith.constant dense<0.000000e+00> : vector<16x16xf32>
    %49 = tpu.matmul %47, %48, %cst_18 {dimension_numbers = #tpu.dot_dimension_numbers<[1], [1], [0], [0], [0, 0, 1, 0], [], []>} : vector<16x8xbf16>, vector<16x8xbf16>, vector<16x16xf32> -> vector<16x16xf32>
    "tpu.trace_stop"() : () -> ()
    %50 = arith.addf %49, %2 : vector<16x16xf32>
    %cst_19 = arith.constant dense<0xFF800000> : vector<16xf32>
    %51 = vector.multi_reduction <maximumf>, %50, %cst_19 [1] : vector<16x16xf32> to vector<16xf32>
    %52 = vector.shape_cast %51 : vector<16xf32> to vector<16x1xf32>
    %53 = vector.broadcast %52 : vector<16x1xf32> to vector<16x16xf32>
    %54 = arith.subf %50, %53 : vector<16x16xf32>
    %55 = math.exp %54 : vector<16x16xf32>
    %cst_20 = arith.constant dense<0.000000e+00> : vector<16xf32>
    %56 = vector.multi_reduction <add>, %55, %cst_20 [1] : vector<16x16xf32> to vector<16xf32>
    %57 = vector.shape_cast %56 : vector<16xf32> to vector<16x1xf32>
    %58 = tpu.reciprocal %57 {approx = true} : vector<16x1xf32> -> vector<16x1xf32>
    %59 = vector.broadcast %58 : vector<16x1xf32> to vector<16x16xf32>
    %60 = arith.mulf %55, %59 : vector<16x16xf32>
    %61 = arith.truncf %60 : vector<16x16xf32> to vector<16x16xbf16>
    %62 = arith.truncf %46 : vector<16x8xf32> to vector<16x8xbf16>
    %cst_21 = arith.constant dense<0.000000e+00> : vector<16x8xf32>
    %63 = tpu.matmul %61, %62, %cst_21 {dimension_numbers = #tpu.dot_dimension_numbers<[1], [0], [0], [1], [0, 0, 1, 1], [], []>} : vector<16x16xbf16>, vector<16x8xbf16>, vector<16x8xf32> -> vector<16x8xf32>
    %64 = vector.extract_strided_slice %18 {offsets = [8, 0], sizes = [8, 32], strides = [1, 1]} : vector<32x32xbf16> to vector<8x32xbf16>
    %65 = arith.truncf %63 : vector<16x8xf32> to vector<16x8xbf16>
    %cst_22 = arith.constant dense<0.000000e+00> : vector<16x32xf32>
    %66 = tpu.matmul %65, %64, %cst_22 {dimension_numbers = #tpu.dot_dimension_numbers<[1], [0], [0], [1], [0, 0, 1, 1], [], []>} : vector<16x8xbf16>, vector<8x32xbf16>, vector<16x32xf32> -> vector<16x32xf32>
    %67 = arith.addf %43, %66 : vector<16x32xf32>
    %68 = vector.extract_strided_slice %15 {offsets = [0, 16], sizes = [16, 8], strides = [1, 1]} : vector<16x32xf32> to vector<16x8xf32>
    %69 = vector.extract_strided_slice %16 {offsets = [0, 16], sizes = [16, 8], strides = [1, 1]} : vector<16x32xf32> to vector<16x8xf32>
    %70 = vector.extract_strided_slice %17 {offsets = [0, 16], sizes = [16, 8], strides = [1, 1]} : vector<16x32xf32> to vector<16x8xf32>
    %71 = arith.truncf %68 : vector<16x8xf32> to vector<16x8xbf16>
    %72 = arith.truncf %69 : vector<16x8xf32> to vector<16x8xbf16>
    "tpu.trace_start"() <{level = 10 : i32, message = "qd,kd->qk"}> : () -> ()
    %cst_23 = arith.constant dense<0.000000e+00> : vector<16x16xf32>
    %73 = tpu.matmul %71, %72, %cst_23 {dimension_numbers = #tpu.dot_dimension_numbers<[1], [1], [0], [0], [0, 0, 1, 0], [], []>} : vector<16x8xbf16>, vector<16x8xbf16>, vector<16x16xf32> -> vector<16x16xf32>
    "tpu.trace_stop"() : () -> ()
    %74 = arith.addf %73, %2 : vector<16x16xf32>
    %cst_24 = arith.constant dense<0xFF800000> : vector<16xf32>
    %75 = vector.multi_reduction <maximumf>, %74, %cst_24 [1] : vector<16x16xf32> to vector<16xf32>
    %76 = vector.shape_cast %75 : vector<16xf32> to vector<16x1xf32>
    %77 = vector.broadcast %76 : vector<16x1xf32> to vector<16x16xf32>
    %78 = arith.subf %74, %77 : vector<16x16xf32>
    %79 = math.exp %78 : vector<16x16xf32>
    %cst_25 = arith.constant dense<0.000000e+00> : vector<16xf32>
    %80 = vector.multi_reduction <add>, %79, %cst_25 [1] : vector<16x16xf32> to vector<16xf32>
    %81 = vector.shape_cast %80 : vector<16xf32> to vector<16x1xf32>
    %82 = tpu.reciprocal %81 {approx = true} : vector<16x1xf32> -> vector<16x1xf32>
    %83 = vector.broadcast %82 : vector<16x1xf32> to vector<16x16xf32>
    %84 = arith.mulf %79, %83 : vector<16x16xf32>
    %85 = arith.truncf %84 : vector<16x16xf32> to vector<16x16xbf16>
    %86 = arith.truncf %70 : vector<16x8xf32> to vector<16x8xbf16>
    %cst_26 = arith.constant dense<0.000000e+00> : vector<16x8xf32>
    %87 = tpu.matmul %85, %86, %cst_26 {dimension_numbers = #tpu.dot_dimension_numbers<[1], [0], [0], [1], [0, 0, 1, 1], [], []>} : vector<16x16xbf16>, vector<16x8xbf16>, vector<16x8xf32> -> vector<16x8xf32>
    %88 = vector.extract_strided_slice %18 {offsets = [16, 0], sizes = [8, 32], strides = [1, 1]} : vector<32x32xbf16> to vector<8x32xbf16>
    %89 = arith.truncf %87 : vector<16x8xf32> to vector<16x8xbf16>
    %cst_27 = arith.constant dense<0.000000e+00> : vector<16x32xf32>
    %90 = tpu.matmul %89, %88, %cst_27 {dimension_numbers = #tpu.dot_dimension_numbers<[1], [0], [0], [1], [0, 0, 1, 1], [], []>} : vector<16x8xbf16>, vector<8x32xbf16>, vector<16x32xf32> -> vector<16x32xf32>
    %91 = arith.addf %67, %90 : vector<16x32xf32>
    %92 = vector.extract_strided_slice %15 {offsets = [0, 24], sizes = [16, 8], strides = [1, 1]} : vector<16x32xf32> to vector<16x8xf32>
    %93 = vector.extract_strided_slice %16 {offsets = [0, 24], sizes = [16, 8], strides = [1, 1]} : vector<16x32xf32> to vector<16x8xf32>
    %94 = vector.extract_strided_slice %17 {offsets = [0, 24], sizes = [16, 8], strides = [1, 1]} : vector<16x32xf32> to vector<16x8xf32>
    %95 = arith.truncf %92 : vector<16x8xf32> to vector<16x8xbf16>
    %96 = arith.truncf %93 : vector<16x8xf32> to vector<16x8xbf16>
    "tpu.trace_start"() <{level = 10 : i32, message = "qd,kd->qk"}> : () -> ()
    %cst_28 = arith.constant dense<0.000000e+00> : vector<16x16xf32>
    %97 = tpu.matmul %95, %96, %cst_28 {dimension_numbers = #tpu.dot_dimension_numbers<[1], [1], [0], [0], [0, 0, 1, 0], [], []>} : vector<16x8xbf16>, vector<16x8xbf16>, vector<16x16xf32> -> vector<16x16xf32>
    "tpu.trace_stop"() : () -> ()
    %98 = arith.addf %97, %2 : vector<16x16xf32>
    %cst_29 = arith.constant dense<0xFF800000> : vector<16xf32>
    %99 = vector.multi_reduction <maximumf>, %98, %cst_29 [1] : vector<16x16xf32> to vector<16xf32>
    %100 = vector.shape_cast %99 : vector<16xf32> to vector<16x1xf32>
    %101 = vector.broadcast %100 : vector<16x1xf32> to vector<16x16xf32>
    %102 = arith.subf %98, %101 : vector<16x16xf32>
    %103 = math.exp %102 : vector<16x16xf32>
    %cst_30 = arith.constant dense<0.000000e+00> : vector<16xf32>
    %104 = vector.multi_reduction <add>, %103, %cst_30 [1] : vector<16x16xf32> to vector<16xf32>
    %105 = vector.shape_cast %104 : vector<16xf32> to vector<16x1xf32>
    %106 = tpu.reciprocal %105 {approx = true} : vector<16x1xf32> -> vector<16x1xf32>
    %107 = vector.broadcast %106 : vector<16x1xf32> to vector<16x16xf32>
    %108 = arith.mulf %103, %107 : vector<16x16xf32>
    %109 = arith.truncf %108 : vector<16x16xf32> to vector<16x16xbf16>
    %110 = arith.truncf %94 : vector<16x8xf32> to vector<16x8xbf16>
    %cst_31 = arith.constant dense<0.000000e+00> : vector<16x8xf32>
    %111 = tpu.matmul %109, %110, %cst_31 {dimension_numbers = #tpu.dot_dimension_numbers<[1], [0], [0], [1], [0, 0, 1, 1], [], []>} : vector<16x16xbf16>, vector<16x8xbf16>, vector<16x8xf32> -> vector<16x8xf32>
    %112 = vector.extract_strided_slice %18 {offsets = [24, 0], sizes = [8, 32], strides = [1, 1]} : vector<32x32xbf16> to vector<8x32xbf16>
    %113 = arith.truncf %111 : vector<16x8xf32> to vector<16x8xbf16>
    %cst_32 = arith.constant dense<0.000000e+00> : vector<16x32xf32>
    %114 = tpu.matmul %113, %112, %cst_32 {dimension_numbers = #tpu.dot_dimension_numbers<[1], [0], [0], [1], [0, 0, 1, 1], [], []>} : vector<16x8xbf16>, vector<8x32xbf16>, vector<16x32xf32> -> vector<16x32xf32>
    %115 = arith.addf %91, %114 : vector<16x32xf32>
    %c16_33 = arith.constant 16 : index
    %c0_34 = arith.constant 0 : index
    %116 = vector.load %arg4[%c16_33, %c0_34] : memref<144x128xf32, #tpu.memory_space<vmem>>, vector<1x32xf32>
    %117 = vector.broadcast %116 : vector<1x32xf32> to vector<16x32xf32>
    %118 = arith.addf %115, %117 : vector<16x32xf32>
    %119 = arith.addf %8, %118 : vector<16x32xf32>
    %c24 = arith.constant 24 : index
    %c0_35 = arith.constant 0 : index
    %120 = vector.load %arg4[%c24, %c0_35] : memref<144x128xf32, #tpu.memory_space<vmem>>, vector<1x32xf32>
    %c32 = arith.constant 32 : index
    %c0_36 = arith.constant 0 : index
    %121 = vector.load %arg4[%c32, %c0_36] : memref<144x128xf32, #tpu.memory_space<vmem>>, vector<1x32xf32>
    %cst_37 = arith.constant dense<0.000000e+00> : vector<16xf32>
    %122 = vector.multi_reduction <add>, %119, %cst_37 [1] : vector<16x32xf32> to vector<16xf32>
    %123 = vector.shape_cast %122 : vector<16xf32> to vector<16x1xf32>
    %cst_38 = arith.constant 3.200000e+01 : f32
    %124 = vector.broadcast %cst_38 : f32 to vector<16x1xf32>
    %125 = arith.divf %123, %124 : vector<16x1xf32>
    %126 = vector.broadcast %125 : vector<16x1xf32> to vector<16x32xf32>
    %127 = arith.subf %119, %126 : vector<16x32xf32>
    %128 = arith.mulf %127, %127 : vector<16x32xf32>
    %cst_39 = arith.constant dense<0.000000e+00> : vector<16xf32>
    %129 = vector.multi_reduction <add>, %128, %cst_39 [1] : vector<16x32xf32> to vector<16xf32>
    %130 = vector.shape_cast %129 : vector<16xf32> to vector<16x1xf32>
    %cst_40 = arith.constant 3.200000e+01 : f32
    %131 = vector.broadcast %cst_40 : f32 to vector<16x1xf32>
    %132 = arith.divf %130, %131 : vector<16x1xf32>
    %133 = vector.broadcast %125 : vector<16x1xf32> to vector<16x32xf32>
    %134 = arith.subf %119, %133 : vector<16x32xf32>
    %cst_41 = arith.constant 9.99999974E-6 : f32
    %135 = vector.broadcast %cst_41 : f32 to vector<16x1xf32>
    %136 = arith.addf %132, %135 : vector<16x1xf32>
    %137 = math.rsqrt %136 : vector<16x1xf32>
    %138 = vector.broadcast %137 : vector<16x1xf32> to vector<16x32xf32>
    %139 = arith.mulf %134, %138 : vector<16x32xf32>
    %140 = vector.broadcast %120 : vector<1x32xf32> to vector<16x32xf32>
    %141 = arith.mulf %139, %140 : vector<16x32xf32>
    %142 = vector.broadcast %121 : vector<1x32xf32> to vector<16x32xf32>
    %143 = arith.addf %141, %142 : vector<16x32xf32>
    %c80 = arith.constant 80 : index
    %c0_42 = arith.constant 0 : index
    %144 = vector.load %arg3[%c80, %c0_42] : memref<496x128xbf16, #tpu.memory_space<vmem>>, vector<32x128xbf16>
    %145 = arith.truncf %143 : vector<16x32xf32> to vector<16x32xbf16>
    %cst_43 = arith.constant dense<0.000000e+00> : vector<16x128xf32>
    %146 = tpu.matmul %145, %144, %cst_43 {dimension_numbers = #tpu.dot_dimension_numbers<[1], [0], [0], [1], [0, 0, 1, 1], [], []>} : vector<16x32xbf16>, vector<32x128xbf16>, vector<16x128xf32> -> vector<16x128xf32>
    %c40 = arith.constant 40 : index
    %c0_44 = arith.constant 0 : index
    %147 = vector.load %arg4[%c40, %c0_44] : memref<144x128xf32, #tpu.memory_space<vmem>>, vector<1x128xf32>
    %148 = vector.broadcast %147 : vector<1x128xf32> to vector<16x128xf32>
    %149 = arith.addf %146, %148 : vector<16x128xf32>
    %cst_45 = arith.constant 0.000000e+00 : f32
    %150 = vector.broadcast %cst_45 : f32 to vector<16x128xf32>
    %151 = arith.maximumf %149, %150 : vector<16x128xf32>
    %c112 = arith.constant 112 : index
    %c0_46 = arith.constant 0 : index
    %152 = vector.load %arg3[%c112, %c0_46] : memref<496x128xbf16, #tpu.memory_space<vmem>>, vector<128x32xbf16>
    %153 = arith.truncf %151 : vector<16x128xf32> to vector<16x128xbf16>
    %cst_47 = arith.constant dense<0.000000e+00> : vector<16x32xf32>
    %154 = tpu.matmul %153, %152, %cst_47 {dimension_numbers = #tpu.dot_dimension_numbers<[1], [0], [0], [1], [0, 0, 1, 1], [], []>} : vector<16x128xbf16>, vector<128x32xbf16>, vector<16x32xf32> -> vector<16x32xf32>
    %c48_48 = arith.constant 48 : index
    %c0_49 = arith.constant 0 : index
    %155 = vector.load %arg4[%c48_48, %c0_49] : memref<144x128xf32, #tpu.memory_space<vmem>>, vector<1x32xf32>
    %156 = vector.broadcast %155 : vector<1x32xf32> to vector<16x32xf32>
    %157 = arith.addf %154, %156 : vector<16x32xf32>
    %158 = arith.addf %143, %157 : vector<16x32xf32>
    %c56 = arith.constant 56 : index
    %c0_50 = arith.constant 0 : index
    %159 = vector.load %arg4[%c56, %c0_50] : memref<144x128xf32, #tpu.memory_space<vmem>>, vector<1x32xf32>
    %c64 = arith.constant 64 : index
    %c0_51 = arith.constant 0 : index
    %160 = vector.load %arg4[%c64, %c0_51] : memref<144x128xf32, #tpu.memory_space<vmem>>, vector<1x32xf32>
    %cst_52 = arith.constant dense<0.000000e+00> : vector<16xf32>
    %161 = vector.multi_reduction <add>, %158, %cst_52 [1] : vector<16x32xf32> to vector<16xf32>
    %162 = vector.shape_cast %161 : vector<16xf32> to vector<16x1xf32>
    %cst_53 = arith.constant 3.200000e+01 : f32
    %163 = vector.broadcast %cst_53 : f32 to vector<16x1xf32>
    %164 = arith.divf %162, %163 : vector<16x1xf32>
    %165 = vector.broadcast %164 : vector<16x1xf32> to vector<16x32xf32>
    %166 = arith.subf %158, %165 : vector<16x32xf32>
    %167 = arith.mulf %166, %166 : vector<16x32xf32>
    %cst_54 = arith.constant dense<0.000000e+00> : vector<16xf32>
    %168 = vector.multi_reduction <add>, %167, %cst_54 [1] : vector<16x32xf32> to vector<16xf32>
    %169 = vector.shape_cast %168 : vector<16xf32> to vector<16x1xf32>
    %cst_55 = arith.constant 3.200000e+01 : f32
    %170 = vector.broadcast %cst_55 : f32 to vector<16x1xf32>
    %171 = arith.divf %169, %170 : vector<16x1xf32>
    %172 = vector.broadcast %164 : vector<16x1xf32> to vector<16x32xf32>
    %173 = arith.subf %158, %172 : vector<16x32xf32>
    %cst_56 = arith.constant 9.99999974E-6 : f32
    %174 = vector.broadcast %cst_56 : f32 to vector<16x1xf32>
    %175 = arith.addf %171, %174 : vector<16x1xf32>
    %176 = math.rsqrt %175 : vector<16x1xf32>
    %177 = vector.broadcast %176 : vector<16x1xf32> to vector<16x32xf32>
    %178 = arith.mulf %173, %177 : vector<16x32xf32>
    %179 = vector.broadcast %159 : vector<1x32xf32> to vector<16x32xf32>
    %180 = arith.mulf %178, %179 : vector<16x32xf32>
    %181 = vector.broadcast %160 : vector<1x32xf32> to vector<16x32xf32>
    %182 = arith.addf %180, %181 : vector<16x32xf32>
    %c240 = arith.constant 240 : index
    %c0_57 = arith.constant 0 : index
    %183 = vector.load %arg3[%c240, %c0_57] : memref<496x128xbf16, #tpu.memory_space<vmem>>, vector<32x96xbf16>
    %184 = arith.truncf %182 : vector<16x32xf32> to vector<16x32xbf16>
    %cst_58 = arith.constant dense<0.000000e+00> : vector<16x96xf32>
    %185 = tpu.matmul %184, %183, %cst_58 {dimension_numbers = #tpu.dot_dimension_numbers<[1], [0], [0], [1], [0, 0, 1, 1], [], []>} : vector<16x32xbf16>, vector<32x96xbf16>, vector<16x96xf32> -> vector<16x96xf32>
    %c72 = arith.constant 72 : index
    %c0_59 = arith.constant 0 : index
    %186 = vector.load %arg4[%c72, %c0_59] : memref<144x128xf32, #tpu.memory_space<vmem>>, vector<1x96xf32>
    %187 = vector.broadcast %186 : vector<1x96xf32> to vector<16x96xf32>
    %188 = arith.addf %185, %187 : vector<16x96xf32>
    %189 = vector.extract_strided_slice %188 {offsets = [0, 0], sizes = [16, 32], strides = [1, 1]} : vector<16x96xf32> to vector<16x32xf32>
    %190 = vector.extract_strided_slice %188 {offsets = [0, 32], sizes = [16, 32], strides = [1, 1]} : vector<16x96xf32> to vector<16x32xf32>
    %191 = vector.extract_strided_slice %188 {offsets = [0, 64], sizes = [16, 32], strides = [1, 1]} : vector<16x96xf32> to vector<16x32xf32>
    %c272 = arith.constant 272 : index
    %c0_60 = arith.constant 0 : index
    %192 = vector.load %arg3[%c272, %c0_60] : memref<496x128xbf16, #tpu.memory_space<vmem>>, vector<32x32xbf16>
    %cst_61 = arith.constant 0.000000e+00 : f32
    %193 = vector.broadcast %cst_61 : f32 to vector<16x32xf32>
    %194 = vector.extract_strided_slice %189 {offsets = [0, 0], sizes = [16, 8], strides = [1, 1]} : vector<16x32xf32> to vector<16x8xf32>
    %195 = vector.extract_strided_slice %190 {offsets = [0, 0], sizes = [16, 8], strides = [1, 1]} : vector<16x32xf32> to vector<16x8xf32>
    %196 = vector.extract_strided_slice %191 {offsets = [0, 0], sizes = [16, 8], strides = [1, 1]} : vector<16x32xf32> to vector<16x8xf32>
    %197 = arith.truncf %194 : vector<16x8xf32> to vector<16x8xbf16>
    %198 = arith.truncf %195 : vector<16x8xf32> to vector<16x8xbf16>
    "tpu.trace_start"() <{level = 10 : i32, message = "qd,kd->qk"}> : () -> ()
    %cst_62 = arith.constant dense<0.000000e+00> : vector<16x16xf32>
    %199 = tpu.matmul %197, %198, %cst_62 {dimension_numbers = #tpu.dot_dimension_numbers<[1], [1], [0], [0], [0, 0, 1, 0], [], []>} : vector<16x8xbf16>, vector<16x8xbf16>, vector<16x16xf32> -> vector<16x16xf32>
    "tpu.trace_stop"() : () -> ()
    %200 = arith.addf %199, %2 : vector<16x16xf32>
    %cst_63 = arith.constant dense<0xFF800000> : vector<16xf32>
    %201 = vector.multi_reduction <maximumf>, %200, %cst_63 [1] : vector<16x16xf32> to vector<16xf32>
    %202 = vector.shape_cast %201 : vector<16xf32> to vector<16x1xf32>
    %203 = vector.broadcast %202 : vector<16x1xf32> to vector<16x16xf32>
    %204 = arith.subf %200, %203 : vector<16x16xf32>
    %205 = math.exp %204 : vector<16x16xf32>
    %cst_64 = arith.constant dense<0.000000e+00> : vector<16xf32>
    %206 = vector.multi_reduction <add>, %205, %cst_64 [1] : vector<16x16xf32> to vector<16xf32>
    %207 = vector.shape_cast %206 : vector<16xf32> to vector<16x1xf32>
    %208 = tpu.reciprocal %207 {approx = true} : vector<16x1xf32> -> vector<16x1xf32>
    %209 = vector.broadcast %208 : vector<16x1xf32> to vector<16x16xf32>
    %210 = arith.mulf %205, %209 : vector<16x16xf32>
    %211 = arith.truncf %210 : vector<16x16xf32> to vector<16x16xbf16>
    %212 = arith.truncf %196 : vector<16x8xf32> to vector<16x8xbf16>
    %cst_65 = arith.constant dense<0.000000e+00> : vector<16x8xf32>
    %213 = tpu.matmul %211, %212, %cst_65 {dimension_numbers = #tpu.dot_dimension_numbers<[1], [0], [0], [1], [0, 0, 1, 1], [], []>} : vector<16x16xbf16>, vector<16x8xbf16>, vector<16x8xf32> -> vector<16x8xf32>
    %214 = vector.extract_strided_slice %192 {offsets = [0, 0], sizes = [8, 32], strides = [1, 1]} : vector<32x32xbf16> to vector<8x32xbf16>
    %215 = arith.truncf %213 : vector<16x8xf32> to vector<16x8xbf16>
    %cst_66 = arith.constant dense<0.000000e+00> : vector<16x32xf32>
    %216 = tpu.matmul %215, %214, %cst_66 {dimension_numbers = #tpu.dot_dimension_numbers<[1], [0], [0], [1], [0, 0, 1, 1], [], []>} : vector<16x8xbf16>, vector<8x32xbf16>, vector<16x32xf32> -> vector<16x32xf32>
    %217 = arith.addf %193, %216 : vector<16x32xf32>
    %218 = vector.extract_strided_slice %189 {offsets = [0, 8], sizes = [16, 8], strides = [1, 1]} : vector<16x32xf32> to vector<16x8xf32>
    %219 = vector.extract_strided_slice %190 {offsets = [0, 8], sizes = [16, 8], strides = [1, 1]} : vector<16x32xf32> to vector<16x8xf32>
    %220 = vector.extract_strided_slice %191 {offsets = [0, 8], sizes = [16, 8], strides = [1, 1]} : vector<16x32xf32> to vector<16x8xf32>
    %221 = arith.truncf %218 : vector<16x8xf32> to vector<16x8xbf16>
    %222 = arith.truncf %219 : vector<16x8xf32> to vector<16x8xbf16>
    "tpu.trace_start"() <{level = 10 : i32, message = "qd,kd->qk"}> : () -> ()
    %cst_67 = arith.constant dense<0.000000e+00> : vector<16x16xf32>
    %223 = tpu.matmul %221, %222, %cst_67 {dimension_numbers = #tpu.dot_dimension_numbers<[1], [1], [0], [0], [0, 0, 1, 0], [], []>} : vector<16x8xbf16>, vector<16x8xbf16>, vector<16x16xf32> -> vector<16x16xf32>
    "tpu.trace_stop"() : () -> ()
    %224 = arith.addf %223, %2 : vector<16x16xf32>
    %cst_68 = arith.constant dense<0xFF800000> : vector<16xf32>
    %225 = vector.multi_reduction <maximumf>, %224, %cst_68 [1] : vector<16x16xf32> to vector<16xf32>
    %226 = vector.shape_cast %225 : vector<16xf32> to vector<16x1xf32>
    %227 = vector.broadcast %226 : vector<16x1xf32> to vector<16x16xf32>
    %228 = arith.subf %224, %227 : vector<16x16xf32>
    %229 = math.exp %228 : vector<16x16xf32>
    %cst_69 = arith.constant dense<0.000000e+00> : vector<16xf32>
    %230 = vector.multi_reduction <add>, %229, %cst_69 [1] : vector<16x16xf32> to vector<16xf32>
    %231 = vector.shape_cast %230 : vector<16xf32> to vector<16x1xf32>
    %232 = tpu.reciprocal %231 {approx = true} : vector<16x1xf32> -> vector<16x1xf32>
    %233 = vector.broadcast %232 : vector<16x1xf32> to vector<16x16xf32>
    %234 = arith.mulf %229, %233 : vector<16x16xf32>
    %235 = arith.truncf %234 : vector<16x16xf32> to vector<16x16xbf16>
    %236 = arith.truncf %220 : vector<16x8xf32> to vector<16x8xbf16>
    %cst_70 = arith.constant dense<0.000000e+00> : vector<16x8xf32>
    %237 = tpu.matmul %235, %236, %cst_70 {dimension_numbers = #tpu.dot_dimension_numbers<[1], [0], [0], [1], [0, 0, 1, 1], [], []>} : vector<16x16xbf16>, vector<16x8xbf16>, vector<16x8xf32> -> vector<16x8xf32>
    %238 = vector.extract_strided_slice %192 {offsets = [8, 0], sizes = [8, 32], strides = [1, 1]} : vector<32x32xbf16> to vector<8x32xbf16>
    %239 = arith.truncf %237 : vector<16x8xf32> to vector<16x8xbf16>
    %cst_71 = arith.constant dense<0.000000e+00> : vector<16x32xf32>
    %240 = tpu.matmul %239, %238, %cst_71 {dimension_numbers = #tpu.dot_dimension_numbers<[1], [0], [0], [1], [0, 0, 1, 1], [], []>} : vector<16x8xbf16>, vector<8x32xbf16>, vector<16x32xf32> -> vector<16x32xf32>
    %241 = arith.addf %217, %240 : vector<16x32xf32>
    %242 = vector.extract_strided_slice %189 {offsets = [0, 16], sizes = [16, 8], strides = [1, 1]} : vector<16x32xf32> to vector<16x8xf32>
    %243 = vector.extract_strided_slice %190 {offsets = [0, 16], sizes = [16, 8], strides = [1, 1]} : vector<16x32xf32> to vector<16x8xf32>
    %244 = vector.extract_strided_slice %191 {offsets = [0, 16], sizes = [16, 8], strides = [1, 1]} : vector<16x32xf32> to vector<16x8xf32>
    %245 = arith.truncf %242 : vector<16x8xf32> to vector<16x8xbf16>
    %246 = arith.truncf %243 : vector<16x8xf32> to vector<16x8xbf16>
    "tpu.trace_start"() <{level = 10 : i32, message = "qd,kd->qk"}> : () -> ()
    %cst_72 = arith.constant dense<0.000000e+00> : vector<16x16xf32>
    %247 = tpu.matmul %245, %246, %cst_72 {dimension_numbers = #tpu.dot_dimension_numbers<[1], [1], [0], [0], [0, 0, 1, 0], [], []>} : vector<16x8xbf16>, vector<16x8xbf16>, vector<16x16xf32> -> vector<16x16xf32>
    "tpu.trace_stop"() : () -> ()
    %248 = arith.addf %247, %2 : vector<16x16xf32>
    %cst_73 = arith.constant dense<0xFF800000> : vector<16xf32>
    %249 = vector.multi_reduction <maximumf>, %248, %cst_73 [1] : vector<16x16xf32> to vector<16xf32>
    %250 = vector.shape_cast %249 : vector<16xf32> to vector<16x1xf32>
    %251 = vector.broadcast %250 : vector<16x1xf32> to vector<16x16xf32>
    %252 = arith.subf %248, %251 : vector<16x16xf32>
    %253 = math.exp %252 : vector<16x16xf32>
    %cst_74 = arith.constant dense<0.000000e+00> : vector<16xf32>
    %254 = vector.multi_reduction <add>, %253, %cst_74 [1] : vector<16x16xf32> to vector<16xf32>
    %255 = vector.shape_cast %254 : vector<16xf32> to vector<16x1xf32>
    %256 = tpu.reciprocal %255 {approx = true} : vector<16x1xf32> -> vector<16x1xf32>
    %257 = vector.broadcast %256 : vector<16x1xf32> to vector<16x16xf32>
    %258 = arith.mulf %253, %257 : vector<16x16xf32>
    %259 = arith.truncf %258 : vector<16x16xf32> to vector<16x16xbf16>
    %260 = arith.truncf %244 : vector<16x8xf32> to vector<16x8xbf16>
    %cst_75 = arith.constant dense<0.000000e+00> : vector<16x8xf32>
    %261 = tpu.matmul %259, %260, %cst_75 {dimension_numbers = #tpu.dot_dimension_numbers<[1], [0], [0], [1], [0, 0, 1, 1], [], []>} : vector<16x16xbf16>, vector<16x8xbf16>, vector<16x8xf32> -> vector<16x8xf32>
    %262 = vector.extract_strided_slice %192 {offsets = [16, 0], sizes = [8, 32], strides = [1, 1]} : vector<32x32xbf16> to vector<8x32xbf16>
    %263 = arith.truncf %261 : vector<16x8xf32> to vector<16x8xbf16>
    %cst_76 = arith.constant dense<0.000000e+00> : vector<16x32xf32>
    %264 = tpu.matmul %263, %262, %cst_76 {dimension_numbers = #tpu.dot_dimension_numbers<[1], [0], [0], [1], [0, 0, 1, 1], [], []>} : vector<16x8xbf16>, vector<8x32xbf16>, vector<16x32xf32> -> vector<16x32xf32>
    %265 = arith.addf %241, %264 : vector<16x32xf32>
    %266 = vector.extract_strided_slice %189 {offsets = [0, 24], sizes = [16, 8], strides = [1, 1]} : vector<16x32xf32> to vector<16x8xf32>
    %267 = vector.extract_strided_slice %190 {offsets = [0, 24], sizes = [16, 8], strides = [1, 1]} : vector<16x32xf32> to vector<16x8xf32>
    %268 = vector.extract_strided_slice %191 {offsets = [0, 24], sizes = [16, 8], strides = [1, 1]} : vector<16x32xf32> to vector<16x8xf32>
    %269 = arith.truncf %266 : vector<16x8xf32> to vector<16x8xbf16>
    %270 = arith.truncf %267 : vector<16x8xf32> to vector<16x8xbf16>
    "tpu.trace_start"() <{level = 10 : i32, message = "qd,kd->qk"}> : () -> ()
    %cst_77 = arith.constant dense<0.000000e+00> : vector<16x16xf32>
    %271 = tpu.matmul %269, %270, %cst_77 {dimension_numbers = #tpu.dot_dimension_numbers<[1], [1], [0], [0], [0, 0, 1, 0], [], []>} : vector<16x8xbf16>, vector<16x8xbf16>, vector<16x16xf32> -> vector<16x16xf32>
    "tpu.trace_stop"() : () -> ()
    %272 = arith.addf %271, %2 : vector<16x16xf32>
    %cst_78 = arith.constant dense<0xFF800000> : vector<16xf32>
    %273 = vector.multi_reduction <maximumf>, %272, %cst_78 [1] : vector<16x16xf32> to vector<16xf32>
    %274 = vector.shape_cast %273 : vector<16xf32> to vector<16x1xf32>
    %275 = vector.broadcast %274 : vector<16x1xf32> to vector<16x16xf32>
    %276 = arith.subf %272, %275 : vector<16x16xf32>
    %277 = math.exp %276 : vector<16x16xf32>
    %cst_79 = arith.constant dense<0.000000e+00> : vector<16xf32>
    %278 = vector.multi_reduction <add>, %277, %cst_79 [1] : vector<16x16xf32> to vector<16xf32>
    %279 = vector.shape_cast %278 : vector<16xf32> to vector<16x1xf32>
    %280 = tpu.reciprocal %279 {approx = true} : vector<16x1xf32> -> vector<16x1xf32>
    %281 = vector.broadcast %280 : vector<16x1xf32> to vector<16x16xf32>
    %282 = arith.mulf %277, %281 : vector<16x16xf32>
    %283 = arith.truncf %282 : vector<16x16xf32> to vector<16x16xbf16>
    %284 = arith.truncf %268 : vector<16x8xf32> to vector<16x8xbf16>
    %cst_80 = arith.constant dense<0.000000e+00> : vector<16x8xf32>
    %285 = tpu.matmul %283, %284, %cst_80 {dimension_numbers = #tpu.dot_dimension_numbers<[1], [0], [0], [1], [0, 0, 1, 1], [], []>} : vector<16x16xbf16>, vector<16x8xbf16>, vector<16x8xf32> -> vector<16x8xf32>
    %286 = vector.extract_strided_slice %192 {offsets = [24, 0], sizes = [8, 32], strides = [1, 1]} : vector<32x32xbf16> to vector<8x32xbf16>
    %287 = arith.truncf %285 : vector<16x8xf32> to vector<16x8xbf16>
    %cst_81 = arith.constant dense<0.000000e+00> : vector<16x32xf32>
    %288 = tpu.matmul %287, %286, %cst_81 {dimension_numbers = #tpu.dot_dimension_numbers<[1], [0], [0], [1], [0, 0, 1, 1], [], []>} : vector<16x8xbf16>, vector<8x32xbf16>, vector<16x32xf32> -> vector<16x32xf32>
    %289 = arith.addf %265, %288 : vector<16x32xf32>
    %c80_82 = arith.constant 80 : index
    %c0_83 = arith.constant 0 : index
    %290 = vector.load %arg4[%c80_82, %c0_83] : memref<144x128xf32, #tpu.memory_space<vmem>>, vector<1x32xf32>
    %291 = vector.broadcast %290 : vector<1x32xf32> to vector<16x32xf32>
    %292 = arith.addf %289, %291 : vector<16x32xf32>
    %293 = arith.addf %182, %292 : vector<16x32xf32>
    %c88 = arith.constant 88 : index
    %c0_84 = arith.constant 0 : index
    %294 = vector.load %arg4[%c88, %c0_84] : memref<144x128xf32, #tpu.memory_space<vmem>>, vector<1x32xf32>
    %c96 = arith.constant 96 : index
    %c0_85 = arith.constant 0 : index
    %295 = vector.load %arg4[%c96, %c0_85] : memref<144x128xf32, #tpu.memory_space<vmem>>, vector<1x32xf32>
    %cst_86 = arith.constant dense<0.000000e+00> : vector<16xf32>
    %296 = vector.multi_reduction <add>, %293, %cst_86 [1] : vector<16x32xf32> to vector<16xf32>
    %297 = vector.shape_cast %296 : vector<16xf32> to vector<16x1xf32>
    %cst_87 = arith.constant 3.200000e+01 : f32
    %298 = vector.broadcast %cst_87 : f32 to vector<16x1xf32>
    %299 = arith.divf %297, %298 : vector<16x1xf32>
    %300 = vector.broadcast %299 : vector<16x1xf32> to vector<16x32xf32>
    %301 = arith.subf %293, %300 : vector<16x32xf32>
    %302 = arith.mulf %301, %301 : vector<16x32xf32>
    %cst_88 = arith.constant dense<0.000000e+00> : vector<16xf32>
    %303 = vector.multi_reduction <add>, %302, %cst_88 [1] : vector<16x32xf32> to vector<16xf32>
    %304 = vector.shape_cast %303 : vector<16xf32> to vector<16x1xf32>
    %cst_89 = arith.constant 3.200000e+01 : f32
    %305 = vector.broadcast %cst_89 : f32 to vector<16x1xf32>
    %306 = arith.divf %304, %305 : vector<16x1xf32>
    %307 = vector.broadcast %299 : vector<16x1xf32> to vector<16x32xf32>
    %308 = arith.subf %293, %307 : vector<16x32xf32>
    %cst_90 = arith.constant 9.99999974E-6 : f32
    %309 = vector.broadcast %cst_90 : f32 to vector<16x1xf32>
    %310 = arith.addf %306, %309 : vector<16x1xf32>
    %311 = math.rsqrt %310 : vector<16x1xf32>
    %312 = vector.broadcast %311 : vector<16x1xf32> to vector<16x32xf32>
    %313 = arith.mulf %308, %312 : vector<16x32xf32>
    %314 = vector.broadcast %294 : vector<1x32xf32> to vector<16x32xf32>
    %315 = arith.mulf %313, %314 : vector<16x32xf32>
    %316 = vector.broadcast %295 : vector<1x32xf32> to vector<16x32xf32>
    %317 = arith.addf %315, %316 : vector<16x32xf32>
    %c304 = arith.constant 304 : index
    %c0_91 = arith.constant 0 : index
    %318 = vector.load %arg3[%c304, %c0_91] : memref<496x128xbf16, #tpu.memory_space<vmem>>, vector<32x128xbf16>
    %319 = arith.truncf %317 : vector<16x32xf32> to vector<16x32xbf16>
    %cst_92 = arith.constant dense<0.000000e+00> : vector<16x128xf32>
    %320 = tpu.matmul %319, %318, %cst_92 {dimension_numbers = #tpu.dot_dimension_numbers<[1], [0], [0], [1], [0, 0, 1, 1], [], []>} : vector<16x32xbf16>, vector<32x128xbf16>, vector<16x128xf32> -> vector<16x128xf32>
    %c104 = arith.constant 104 : index
    %c0_93 = arith.constant 0 : index
    %321 = vector.load %arg4[%c104, %c0_93] : memref<144x128xf32, #tpu.memory_space<vmem>>, vector<1x128xf32>
    %322 = vector.broadcast %321 : vector<1x128xf32> to vector<16x128xf32>
    %323 = arith.addf %320, %322 : vector<16x128xf32>
    %cst_94 = arith.constant 0.000000e+00 : f32
    %324 = vector.broadcast %cst_94 : f32 to vector<16x128xf32>
    %325 = arith.maximumf %323, %324 : vector<16x128xf32>
    %c336 = arith.constant 336 : index
    %c0_95 = arith.constant 0 : index
    %326 = vector.load %arg3[%c336, %c0_95] : memref<496x128xbf16, #tpu.memory_space<vmem>>, vector<128x32xbf16>
    %327 = arith.truncf %325 : vector<16x128xf32> to vector<16x128xbf16>
    %cst_96 = arith.constant dense<0.000000e+00> : vector<16x32xf32>
    %328 = tpu.matmul %327, %326, %cst_96 {dimension_numbers = #tpu.dot_dimension_numbers<[1], [0], [0], [1], [0, 0, 1, 1], [], []>} : vector<16x128xbf16>, vector<128x32xbf16>, vector<16x32xf32> -> vector<16x32xf32>
    %c112_97 = arith.constant 112 : index
    %c0_98 = arith.constant 0 : index
    %329 = vector.load %arg4[%c112_97, %c0_98] : memref<144x128xf32, #tpu.memory_space<vmem>>, vector<1x32xf32>
    %330 = vector.broadcast %329 : vector<1x32xf32> to vector<16x32xf32>
    %331 = arith.addf %328, %330 : vector<16x32xf32>
    %332 = arith.addf %317, %331 : vector<16x32xf32>
    %c120 = arith.constant 120 : index
    %c0_99 = arith.constant 0 : index
    %333 = vector.load %arg4[%c120, %c0_99] : memref<144x128xf32, #tpu.memory_space<vmem>>, vector<1x32xf32>
    %c128 = arith.constant 128 : index
    %c0_100 = arith.constant 0 : index
    %334 = vector.load %arg4[%c128, %c0_100] : memref<144x128xf32, #tpu.memory_space<vmem>>, vector<1x32xf32>
    %cst_101 = arith.constant dense<0.000000e+00> : vector<16xf32>
    %335 = vector.multi_reduction <add>, %332, %cst_101 [1] : vector<16x32xf32> to vector<16xf32>
    %336 = vector.shape_cast %335 : vector<16xf32> to vector<16x1xf32>
    %cst_102 = arith.constant 3.200000e+01 : f32
    %337 = vector.broadcast %cst_102 : f32 to vector<16x1xf32>
    %338 = arith.divf %336, %337 : vector<16x1xf32>
    %339 = vector.broadcast %338 : vector<16x1xf32> to vector<16x32xf32>
    %340 = arith.subf %332, %339 : vector<16x32xf32>
    %341 = arith.mulf %340, %340 : vector<16x32xf32>
    %cst_103 = arith.constant dense<0.000000e+00> : vector<16xf32>
    %342 = vector.multi_reduction <add>, %341, %cst_103 [1] : vector<16x32xf32> to vector<16xf32>
    %343 = vector.shape_cast %342 : vector<16xf32> to vector<16x1xf32>
    %cst_104 = arith.constant 3.200000e+01 : f32
    %344 = vector.broadcast %cst_104 : f32 to vector<16x1xf32>
    %345 = arith.divf %343, %344 : vector<16x1xf32>
    %346 = vector.broadcast %338 : vector<16x1xf32> to vector<16x32xf32>
    %347 = arith.subf %332, %346 : vector<16x32xf32>
    %cst_105 = arith.constant 9.99999974E-6 : f32
    %348 = vector.broadcast %cst_105 : f32 to vector<16x1xf32>
    %349 = arith.addf %345, %348 : vector<16x1xf32>
    %350 = math.rsqrt %349 : vector<16x1xf32>
    %351 = vector.broadcast %350 : vector<16x1xf32> to vector<16x32xf32>
    %352 = arith.mulf %347, %351 : vector<16x32xf32>
    %353 = vector.broadcast %333 : vector<1x32xf32> to vector<16x32xf32>
    %354 = arith.mulf %352, %353 : vector<16x32xf32>
    %355 = vector.broadcast %334 : vector<1x32xf32> to vector<16x32xf32>
    %356 = arith.addf %354, %355 : vector<16x32xf32>
    %357 = vector.shape_cast %356 : vector<16x32xf32> to vector<2x8x32xf32>
    %cst_106 = arith.constant dense<0.000000e+00> : vector<2x32xf32>
    %358 = vector.multi_reduction <add>, %357, %cst_106 [1] : vector<2x8x32xf32> to vector<2x32xf32>
    %cst_107 = arith.constant 8.000000e+00 : f32
    %359 = vector.broadcast %cst_107 : f32 to vector<2x32xf32>
    %360 = arith.divf %358, %359 : vector<2x32xf32>
    %c464 = arith.constant 464 : index
    %c0_108 = arith.constant 0 : index
    %361 = vector.load %arg3[%c464, %c0_108] : memref<496x128xbf16, #tpu.memory_space<vmem>>, vector<32x2xbf16>
    %362 = arith.truncf %360 : vector<2x32xf32> to vector<2x32xbf16>
    %cst_109 = arith.constant dense<0.000000e+00> : vector<2x2xf32>
    %363 = tpu.matmul %362, %361, %cst_109 {dimension_numbers = #tpu.dot_dimension_numbers<[1], [0], [0], [1], [0, 0, 1, 1], [], []>} : vector<2x32xbf16>, vector<32x2xbf16>, vector<2x2xf32> -> vector<2x2xf32>
    %c136 = arith.constant 136 : index
    %c0_110 = arith.constant 0 : index
    %364 = vector.load %arg4[%c136, %c0_110] : memref<144x128xf32, #tpu.memory_space<vmem>>, vector<1x2xf32>
    %365 = vector.broadcast %364 : vector<1x2xf32> to vector<2x2xf32>
    %366 = arith.addf %363, %365 : vector<2x2xf32>
    %c0_111 = arith.constant 0 : index
    %c0_112 = arith.constant 0 : index
    %c0_113 = arith.constant 0 : index
    %367 = vector.load %arg5[%c0_111, %c0_112, %c0_113] : memref<1x2x2xf32, #tpu.memory_space<vmem>>, vector<1x2x2xf32>
    %368 = vector.shape_cast %367 : vector<1x2x2xf32> to vector<2x2xf32>
    %369 = vector.shape_cast %366 : vector<2x2xf32> to vector<1x2x2xf32>
    tpu.vector_store %arg5[%c0_111, %c0_112, %c0_113], %369 {strides = array<i32>} : memref<1x2x2xf32, #tpu.memory_space<vmem>>, vector<1x2x2xf32>,
    return
  }
  func.func @transform_0(%arg0: i32) -> (i32, i32, i32) {
    %c0_i32 = arith.constant 0 : i32
    %c0_i32_0 = arith.constant 0 : i32
    %c0_i32_1 = arith.constant 0 : i32
    return %arg0, %c0_i32, %c0_i32_0 : i32, i32, i32
  }
  func.func @transform_1(%arg0: i32) -> (i32, i32) {
    %c0_i32 = arith.constant 0 : i32
    %c0_i32_0 = arith.constant 0 : i32
    %c0_i32_1 = arith.constant 0 : i32
    return %c0_i32, %c0_i32_0 : i32, i32
  }
  func.func @transform_2(%arg0: i32) -> (i32, i32) {
    %c0_i32 = arith.constant 0 : i32
    %c0_i32_0 = arith.constant 0 : i32
    %c0_i32_1 = arith.constant 0 : i32
    return %c0_i32, %c0_i32_0 : i32, i32
  }
  func.func @transform_3(%arg0: i32) -> (i32, i32) {
    %c0_i32 = arith.constant 0 : i32
    %c0_i32_0 = arith.constant 0 : i32
    %c0_i32_1 = arith.constant 0 : i32
    return %c0_i32, %c0_i32_0 : i32, i32
  }
  func.func @transform_4(%arg0: i32) -> (i32, i32, i32) {
    %c0_i32 = arith.constant 0 : i32
    %c0_i32_0 = arith.constant 0 : i32
    %c0_i32_1 = arith.constant 0 : i32
    return %arg0, %c0_i32, %c0_i32_0 : i32, i32, i32
  }
}

</mosaic_0001>

<bundles_post_ra>
// kernel: tpu_custom_call.1
= control target key start
LH: loop header
LB: loop body
LE: loop exit
PB: predicated region body
PF: predicated region fallthrough
CT: control target
= control target key end

     0   :  { %9 = vsyncpa [#allocation3], 0  ;;  %s3363_s0 = inlined_call_operand.hbm [shape: f32[2,8,13], index: 0, kind: input, shape index: {}]   ;;  %s3364_s1 = inlined_call_operand.hbm [shape: f32[16,16], index: 1, kind: input, shape index: {}]   ;;  %s3365_s2 = inlined_call_operand.hbm [shape: bf16[496,128], index: 2, kind: input, shape index: {}]   ;;  %s3366_s3 = inlined_call_operand.hbm [shape: f32[144,128], index: 3, kind: input, shape index: {}]   ;;  %s3367_s4 = inlined_call_operand.hbm [shape: f32[1,2,2], index: 4, kind: output, shape index: {}]  }
   0x1   :  { %10 = vsyncpa [#allocation6], 0 }
   0x2   :  { %11 = vsyncpa [#allocation9], 0 }
   0x3   :  { %12 = vsyncpa [#allocation4], 0  ;;  %s2934_s15 = smov [#allocation5]   ;;  %s2935_s17 = smov [#allocation2]  }
   0x4   :  { %s30_s16 = sshll.u32 %s2934_s15, 4  ;;  %s18_s18 = sshll.u32 %s2935_s17, 4  ;;  %s31_s16 = int_to_ptr.vmem [resolvable:$true] %s30_s16  ;;  %s2981_s18 = int_to_ptr.vmem [resolvable:$true] %s18_s18 }
   0x5   :  { %s2816_s21 = scalar_lea.hbm %s3364_s1, 256 }
   0x6   :  { %p2817_p0 = scmp.ne.s32.totalorder %s3364_s1, %s2816_s21  ;;  %p2820_p1 = scmp.lt.u32.totalorder %s2816_s21, %s3364_s1 }
   0x8   :  { %p2822_p2 = pnand %p2820_p1, %p2817_p0 }
   0xa   :  { %2825 = shalt.err (!%p2822_p2)
}
   0xb   :  { %s2826_s26 = scalar_lea.vmem %s31_s16, 256  ;;  %p2831_p4 = scmp.lt.s32.totalorder %s31_s16, %s31_s16 }
   0xc   :  { %p2827_p3 = scmp.ne.s32.totalorder %s31_s16, %s2826_s26  ;;  %p2832_p5 = scmp.lt.s32.totalorder %s2826_s26, %s2826_s26 }
   0xe   :  { %p2833_p6 = por %p2832_p5, %p2831_p4 }
  0x10   :  { %p2834_p7 = pnand %p2833_p6, %p2827_p3 }
  0x12   :  { %2837 = shalt.err (!%p2834_p7)
}
  0x13   :  { %s2936_s27 = smov 128   ;;  %s2937_s28 = smov 8  }
  0x14   :  { %36 = dma.hbm_to_vmem [thread:$0]  %s3364_s1, 256, %s31_s16, [#allocation6], %s2936_s27, %s2936_s27, %s2937_s28  }
  0x15   :  { %s2838_s7 = scalar_lea.hbm %s3363_s0, 256 }
  0x16   :  { %p2839_p8 = scmp.ne.s32.totalorder %s3363_s0, %s2838_s7  ;;  %p2842_p9 = scmp.lt.u32.totalorder %s2838_s7, %s3363_s0 }
  0x18   :  { %p2844_p10 = pnand %p2842_p9, %p2839_p8 }
  0x1a   :  { %2847 = shalt.err (!%p2844_p10)
}
  0x1b   :  { %s2848_s12 = scalar_lea.vmem %s2981_s18, 256  ;;  %p2853_p12 = scmp.lt.s32.totalorder %s2981_s18, %s2981_s18 }
  0x1c   :  { %p2849_p11 = scmp.ne.s32.totalorder %s2981_s18, %s2848_s12  ;;  %p2854_p13 = scmp.lt.s32.totalorder %s2848_s12, %s2848_s12 }
  0x1e   :  { %p2855_p0 = por %p2854_p13, %p2853_p12 }
  0x20   :  { %p2856_p1 = pnand %p2855_p0, %p2849_p11 }
  0x22   :  { %2859 = shalt.err (!%p2856_p1)
}
  0x23   :  { %24 = dma.hbm_to_vmem [thread:$0]  %s3363_s0, 256, %s2981_s18, [#allocation3], %s2936_s27, %s2936_s27, %s2937_s28  }
  0x24   :  { %s2938_s14 = smov [#allocation7]   ;;  %s2860_s19 = scalar_lea.hbm %s3365_s2, 3968 }
  0x25   :  { %s42_s15 = sshll.u32 %s2938_s14, 4  ;;  %p2861_p2 = scmp.ne.s32.totalorder %s3365_s2, %s2860_s19  ;;  %s43_s15 = int_to_ptr.vmem [resolvable:$true] %s42_s15 }
  0x26   :  { %p2864_p3 = scmp.lt.u32.totalorder %s2860_s19, %s3365_s2 }
  0x28   :  { %p2866_p4 = pnand %p2864_p3, %p2861_p2 }
  0x2a   :  { %2869 = shalt.err (!%p2866_p4)
}
  0x2b   :  { %s2870_s24 = scalar_lea.vmem %s43_s15, 3968  ;;  %p2875_p6 = scmp.lt.s32.totalorder %s43_s15, %s43_s15 }
  0x2c   :  { %p2871_p5 = scmp.ne.s32.totalorder %s43_s15, %s2870_s24  ;;  %p2876_p7 = scmp.lt.s32.totalorder %s2870_s24, %s2870_s24 }
  0x2e   :  { %p2877_p8 = por %p2876_p7, %p2875_p6 }
  0x30   :  { %p2878_p9 = pnand %p2877_p8, %p2871_p5 }
  0x32   :  { %2881 = shalt.err (!%p2878_p9)
}
  0x33   :  { %s2939_s0 = smov 64   ;;  %s2940_s18 = smov 4  }
  0x34   :  { %48 = dma.hbm_to_vmem [thread:$0]  %s3365_s2, 3968, %s43_s15, [#allocation6], %s2939_s0, %s2939_s0, %s2940_s18  }
  0x35   :  { %s2941_s29 = smov [#allocation8]   ;;  %s2882_s7 = scalar_lea.hbm %s3366_s3, 2304 }
  0x36   :  { %s54_s30 = sshll.u32 %s2941_s29, 4  ;;  %p2883_p10 = scmp.ne.s32.totalorder %s3366_s3, %s2882_s7  ;;  %s55_s30 = int_to_ptr.vmem [resolvable:$true] %s54_s30 }
  0x37   :  { %p2886_p11 = scmp.lt.u32.totalorder %s2882_s7, %s3366_s3 }
  0x39   :  { %p2888_p12 = pnand %p2886_p11, %p2883_p10 }
  0x3b   :  { %2891 = shalt.err (!%p2888_p12)
}
  0x3c   :  { %s2892_s12 = scalar_lea.vmem %s55_s30, 2304  ;;  %p2897_p0 = scmp.lt.s32.totalorder %s55_s30, %s55_s30 }
  0x3d   :  { %p2893_p13 = scmp.ne.s32.totalorder %s55_s30, %s2892_s12  ;;  %p2898_p1 = scmp.lt.s32.totalorder %s2892_s12, %s2892_s12 }
  0x3f   :  { %p2899_p2 = por %p2898_p1, %p2897_p0 }
  0x41   :  { %p2900_p3 = pnand %p2899_p2, %p2893_p13 }
  0x43   :  { %2903 = shalt.err (!%p2900_p3)
}
  0x44   :  { %60 = dma.hbm_to_vmem [thread:$0]  %s3366_s3, 2304, %s55_s30, [#allocation9], %s2936_s27, %s2936_s27, %s2937_s28  }
  0x45   :  { %2926 = dma.done.wait [#allocation3], 256  }
  0x46   :  { %2927 = vsyncadd [#allocation3], 4294967040 }
  0x47   :  { %2928 = dma.done.wait [#allocation6], 4224  }
  0x48   :  { %2929 = vsyncadd [#allocation6], 4294963072 }
  0x49   :  { %2930 = dma.done.wait [#allocation9], 2304  }
  0x4a   :  { %2931 = vsyncadd [#allocation9], 4294964992  ;;  %vm95_vm0 = vcmask 1045504   ;;  %v2942_v0 = vmov 0.0   ;;  %vm2943_vm1 = vmmov 0   ;;  %vm96_vm2 = vcmask 1046528  }
  0x4b   :  { %2455 = vmatprep.subr.bf16.mxu0 %v2942_v0  ;;  %2475 = vmatprep.subr.bf16.mxu1 %v2942_v0  ;;  %v2944_v1 = vmov 65535   ;;  %v2707_v4 = vld [vmem:[#allocation7] sm:$0x7f]   ;;  %v75_v6 = vld [vmem:[#allocation2 + $0x8] sm:$0xff]  ;;  %vm91_vm3 = vcmask 105472   ;;  %v2709_v10 = vld [vmem:[#allocation7 + $0x10] sm:$0xff]  }
  0x4c   :  { %2457 = vmatprep.mubr.msk.bf16.mxu0 %vm2943_vm1, %v2942_v0  ;;  %2477 = vmatprep.mubr.msk.bf16.mxu1 %vm2943_vm1, %v2942_v0  ;;  %v97_v2 = vsel %vm95_vm0, 4294967295, %v2944_v1  ;;  %v74_v5 = vld [vmem:[#allocation2] sm:$0xff]  ;;  %v2708_v9 = vld [vmem:[#allocation7 + $0x8] sm:$0xff]   ;;  %v2297_v11 = vld [vmem:[#allocation8] ss:$0 sm:$0xff]  ;;  %vm165_vm4 = vcmask 261120  }
  0x4d   :  { %v98_v3 = vsel %vm96_vm2, %v97_v2, 0  ;;  %v80_v8 = vpack.c.bf16 %v75_v6, %v74_v5  ;;  %v2300_v19 = vld [vmem:[#allocation8 + $0x8] ss:$0 sm:$0xff]  ;;  %s2945_s3 = smov 120   ;;  %s2946_s27 = smov 96   ;;  %vm218_vm5 = vcmask 64512  }
  0x4e   :  { %v100_v7 = vand.u32 %v2707_v4, %v98_v3  ;;  %s2947_s28 = smov 88   ;;  %v3086_v32 = vld [vmem:[#allocation5] sm:$0xff]  ;;  %v3088_v34 = vld [vmem:[#allocation5 + $0x8] sm:$0xff]  ;;  %vm266_vm6 = vcmask 130048   ;;  %s2948_s13 = smov 56   ;;  %vm463_vm7 = vcmask 1043456  }
  0x4f   :  { %s2949_s14 = smov 80   ;;  %s2950_s15 = smov 112   ;;  %vm2220_vm8 = vcmask 1041409   ;;  %vm2278_vm9 = vcmask 9216  }
  0x50   :  { %2456 = vmatpush3.bf16.msra.mxu0 %v100_v7  ;;  %s2951_s16 = smov 72   ;;  %s2952_s17 = smov 48  }
  0x51   :  { %2461 = vmatprep.subr.bf16.mxu0 %v2942_v0  ;;  %s2953_s19 = smov 104   ;;  %s2954_s20 = smov 40  }
  0x52   :  { %s2955_s21 = smov [#allocation10]  }
  0x53   :  { %2458 = vmatmul.mubr.msk.bf16.vlgmr.msra.gmra.mrb[0].mxu0 %vm91_vm3, %v80_v8  ;;  %s2286_s22 = sshll.u32 %s2955_s21, 4  ;;  %s2287_s22 = int_to_ptr.vmem [resolvable:$true] %s2286_s22 }
  0x54   :  { %2465 = vmatprep.mubr.msk.bf16.mxu0 %vm2943_vm1, %v2942_v0  ;;  %2462 = vmatpush3.bf16.msra.mxu0 %v2708_v9  ;;  %s2904_s23 = scalar_lea.vmem %s2287_s22, 32  ;;  %p2909_p5 = scmp.lt.s32.totalorder %s2287_s22, %s2287_s22 }
  0x55   :  { %2463 = vmatprep.subr.bf16.mxu0 %v2942_v0  ;;  %p2905_p4 = scmp.ne.s32.totalorder %s2287_s22, %s2904_s23  ;;  %p2910_p6 = scmp.lt.s32.totalorder %s2904_s23, %s2904_s23 }
  0x57   :  { %p2911_p7 = por %p2910_p6, %p2909_p5 }
  0x58   :  { %2464 = vmatpush3.bf16.msra.mxu0 %v2709_v10 }
  0x59   :  { %2469 = vmatprep.subr.bf16.mxu0 %v2942_v0  ;;  %p2912_p8 = pnand %p2911_p7, %p2905_p4 }
 0x126   :  { %v136_v12 = vpop.f32.mrb[0].mxu0 }
 0x127   :  { %v2459_v13 = vpop.f32.mrb[1].mxu0  ;;  %v3058_v15 = vadd.f32 %v2297_v11, %v136_v12 }
 0x128   :  { %v139_v14 = vpop.f32.mrb[2].mxu0 }
 0x129   :  { %v3060_v16 = vadd.f32 %v2297_v11, %v139_v14  ;;  %v2460_v17 = vpop.f32.mrb[3].mxu0 }
 0x12b   :  { %v147_v18 = vpack.c.bf16 %v3060_v16, %v3058_v15 }
 0x12d   :  { %2466 = vmatmul.mubr.msk.bf16.vlgmr.msra.gmra.mrb[4].mxu0 %vm165_vm4, %v147_v18 }
 0x12e   :  { %2471 = vmatprep.mubr.msk.bf16.mxu0 %vm2943_vm1, %v2942_v0 }
 0x200   :  { %v203_v20 = vpop.f32.mrb[4].mxu0 }
 0x201   :  { %v2467_v21 = vpop.f32.mrb[5].mxu0  ;;  %v204_v23 = vadd.f32 %v2300_v19, %v203_v20 }
 0x202   :  { %v206_v22 = vpop.f32.mrb[6].mxu0 }
 0x203   :  { %v207_v24 = vadd.f32 %v2300_v19, %v206_v22  ;;  %v2468_v25 = vpop.f32.mrb[7].mxu0 }
 0x204   :  { %v210_v25 = vld [vmem:[#allocation7 + $0x18] sm:$0xf] }
 0x205   :  { %v3067_v26 = vpack.c.bf16 %v207_v24, %v204_v23 }
 0x207   :  { %338 = vrot.lane.b32.xlu1 %v3067_v26, %s2945_s3  ;;  %216 = vrot.lane.b32.xlu0 %v3067_v26, %s2946_s27 }
 0x20b   :  { %340 = vrot.lane.b32.xlu0 %v3067_v26, %s2947_s28 }
 0x279   :  { %v217_v27 = vpop.permute.xlu0 %216  ;;  %v339_v31 = vpop.permute.xlu1 %338 }
 0x27a   :  { %v223_v28 = vsel %vm218_vm5, %v217_v27, 0  ;;  %v512_v27 = vsel %vm463_vm7, %v210_v25, 0 }
 0x27b   :  { %2470 = vmatpush3.bf16.xpose.msra.mxu0 %v223_v28  ;;  %v211_v28 = vld [vmem:[#allocation7 + $0x1c] sm:$0xf] }
 0x27c   :  { %2481 = vmatprep.subr.bf16.mxu0 %v2942_v0 }
 0x27d   :  { %v341_v29 = vpop.permute.xlu0 %340 }
 0x27e   :  { %v346_v30 = vsel %vm218_vm5, %v341_v29, 0  ;;  %v465_v29 = vsel %vm463_vm7, %v211_v28, 0 }
 0x282   :  { %2472 = vmatmul.mubr.msk.bf16.vlgmr.msra.gmra.mrb[8].mxu0 %vm218_vm5, %v3067_v26 }
 0x283   :  { %2482 = vmatpush3.bf16.xpose.msra.mxu0 %v346_v30  ;;  %2483 = vmatprep.mubr.msk.bf16.mxu0 %vm2943_vm1, %v2942_v0 }
 0x284   :  { %2493 = vmatprep.subr.bf16.mxu0 %v2942_v0 }
 0x28a   :  { %2484 = vmatmul.mubr.msk.bf16.vlgmr.msra.gmra.mrb[12].mxu0 %vm218_vm5, %v339_v31 }
 0x28b   :  { %2495 = vmatprep.mubr.msk.bf16.mxu0 %vm2943_vm1, %v2942_v0  ;;  %2494 = vmatpush3.bf16.msra.mxu0 %v465_v29 }
 0x28c   :  { %2505 = vmatprep.subr.bf16.mxu0 %v2942_v0 }
 0x355   :  { %v259_v33 = vpop.f32.mrb[8].mxu0 }
 0x356   :  { %v260_v35 = vadd.f32 %v259_v33, %v3086_v32  ;;  %v2473_v36 = vpop.f32.mrb[9].mxu0 }
 0x357   :  { %v262_v37 = vpop.f32.mrb[10].mxu0 }
 0x358   :  { %v263_v38 = vadd.f32 %v262_v37, %v3088_v34  ;;  %v2474_v39 = vpop.f32.mrb[11].mxu0  ;;  %v267_v40 = vsel %vm266_vm6, %v260_v35, -inf }
 0x359   :  { %268 = vmax.xlane.f32.xlu1 %v267_v40 }
 0x35a   :  { %v270_v41 = vsel %vm266_vm6, %v263_v38, -inf }
 0x35b   :  { %271 = vmax.xlane.f32.xlu0 %v270_v41 }
 0x35d   :  { %v382_v42 = vpop.f32.mrb[12].mxu0 }
 0x35e   :  { %v383_v43 = vadd.f32 %v382_v42, %v3086_v32  ;;  %v2485_v44 = vpop.f32.mrb[13].mxu0 }
 0x35f   :  { %v385_v45 = vpop.f32.mrb[14].mxu0 }
 0x360   :  { %v386_v46 = vadd.f32 %v385_v45, %v3088_v34  ;;  %v2486_v47 = vpop.f32.mrb[15].mxu0  ;;  %v389_v48 = vsel %vm266_vm6, %v383_v43, -inf }
 0x361   :  { %390 = vmax.xlane.f32.xlu0 %v389_v48 }
 0x362   :  { %v392_v49 = vsel %vm266_vm6, %v386_v46, -inf }
 0x363   :  { %393 = vmax.xlane.f32.xlu1 %v392_v49 }
 0x3e6   :  { %v269_v50 = vpop.xlane.xlu1 %268 }
 0x3e7   :  { %v273_v51 = vsub.f32 %v260_v35, %v269_v50 }
 0x3e8   :  { %v272_v52 = vpop.xlane.xlu0 %271 }
 0x3e9   :  { %v275_v53 = vmul.f32 1.442695, %v273_v51  ;;  %v274_v54 = vsub.f32 %v263_v38, %v272_v52 }
 0x3eb   :  { %2734 = vpow2.f32 %v275_v53  ;;  %v277_v55 = vmul.f32 1.442695, %v274_v54 }
 0x3ed   :  { %2736 = vpow2.f32 %v277_v55 }
 0x3ee   :  { %v391_v56 = vpop.xlane.xlu0 %390 }
 0x3ef   :  { %v395_v57 = vsub.f32 %v383_v43, %v391_v56 }
 0x3f0   :  { %v394_v58 = vpop.xlane.xlu1 %393 }
 0x3f1   :  { %v397_v59 = vmul.f32 1.442695, %v395_v57  ;;  %v396_v60 = vsub.f32 %v386_v46, %v394_v58 }
 0x3f3   :  { %2738 = vpow2.f32 %v397_v59  ;;  %v399_v61 = vmul.f32 1.442695, %v396_v60 }
 0x3f5   :  { %v2735_v62 = vpop.eup %2734  ;;  %2740 = vpow2.f32 %v399_v61 }
 0x3f6   :  { %v279_v63 = vsel %vm266_vm6, %v2735_v62, 0.0 }
 0x3f7   :  { %v2737_v1 = vpop.eup %2736  ;;  %280 = vadd.xlane.f32.xlu0 %v279_v63 }
 0x3f8   :  { %v282_v2 = vsel %vm266_vm6, %v2737_v1, 0.0 }
 0x3f9   :  { %283 = vadd.xlane.f32.xlu1 %v282_v2 }
 0x3fd   :  { %v2739_v3 = vpop.eup %2738 }
 0x3fe   :  { %v401_v4 = vsel %vm266_vm6, %v2739_v3, 0.0 }
 0x3ff   :  { %v2741_v5 = vpop.eup %2740  ;;  %402 = vadd.xlane.f32.xlu0 %v401_v4 }
 0x400   :  { %v404_v6 = vsel %vm266_vm6, %v2741_v5, 0.0 }
 0x401   :  { %405 = vadd.xlane.f32.xlu1 %v404_v6 }
 0x412   :  { %412 = vrot.lane.b32.xlu1 %v3067_v26, %s2948_s13 }
 0x415   :  { %290 = vrot.lane.b32.xlu0 %v3067_v26, %s2939_s0 }
 0x416   :  { %557 = vrot.lane.b32.xlu1 %v3067_v26, %s2949_s14 }
 0x419   :  { %555 = vrot.lane.b32.xlu0 %v3067_v26, %s2950_s15 }
 0x484   :  { %v281_v7 = vpop.xlane.xlu0 %280 }
 0x485   :  { %2742 = vrcp.f32 %v281_v7 }
 0x486   :  { %v284_v8 = vpop.xlane.xlu1 %283 }
 0x487   :  { %2744 = vrcp.f32 %v284_v8 }
 0x48c   :  { %v403_v9 = vpop.xlane.xlu0 %402 }
 0x48d   :  { %2746 = vrcp.f32 %v403_v9 }
 0x48e   :  { %v406_v10 = vpop.xlane.xlu1 %405 }
 0x48f   :  { %v2743_v11 = vpop.eup %2742  ;;  %2748 = vrcp.f32 %v406_v10 }
 0x490   :  { %v291_v12 = vpop.permute.xlu0 %290  ;;  %v287_v14 = vmul.f32 %v2743_v11, %v2735_v62 }
 0x491   :  { %v2745_v13 = vpop.eup %2744  ;;  %2476 = vmatpush3.bf16.msra.mxu1 %v291_v12 }
 0x492   :  { %2487 = vmatprep.subr.bf16.mxu1 %v2942_v0  ;;  %v288_v17 = vmul.f32 %v2745_v13, %v2737_v1  ;;  %v413_v19 = vpop.permute.xlu1 %412 }
 0x494   :  { %v289_v18 = vpack.c.bf16 %v288_v17, %v287_v14  ;;  %v556_v44 = vpop.permute.xlu0 %555 }
 0x496   :  { %2478 = vmatmul.mubr.msk.bf16.vlgmr.msra.gmra.mrb[0].mxu1 %vm266_vm6, %v289_v18  ;;  %v558_v39 = vpop.permute.xlu1 %557 }
 0x497   :  { %v2747_v20 = vpop.eup %2746  ;;  %2488 = vmatpush3.bf16.msra.mxu1 %v413_v19  ;;  %2489 = vmatprep.mubr.msk.bf16.mxu1 %vm2943_vm1, %v2942_v0  ;;  %v563_v43 = vsel %vm218_vm5, %v558_v39, 0 }
 0x498   :  { %2499 = vmatprep.subr.bf16.mxu1 %v2942_v0  ;;  %v409_v22 = vmul.f32 %v2747_v20, %v2739_v3 }
 0x499   :  { %v2749_v21 = vpop.eup %2748 }
 0x49a   :  { %v410_v23 = vmul.f32 %v2749_v21, %v2741_v5 }
 0x49c   :  { %v411_v24 = vpack.c.bf16 %v410_v23, %v409_v22  ;;  %v212_v23 = vld [vmem:[#allocation7 + $0x20] sm:$0xf] }
 0x49e   :  { %2490 = vmatmul.mubr.msk.bf16.vlgmr.msra.gmra.mrb[4].mxu1 %vm266_vm6, %v411_v24  ;;  %v681_v24 = vsel %vm463_vm7, %v212_v23, 0 }
 0x49f   :  { %2501 = vmatprep.mubr.msk.bf16.mxu1 %vm2943_vm1, %v2942_v0  ;;  %2500 = vmatpush3.bf16.msra.mxu1 %v512_v27 }
 0x4a0   :  { %2511 = vmatprep.subr.bf16.mxu1 %v2942_v0 }
 0x569   :  { %v330_v30 = vpop.f32.mrb[0].mxu1 }
 0x56a   :  { %v2479_v31 = vpop.f32.mrb[1].mxu1 }
 0x56b   :  { %v333_v33 = vpop.f32.mrb[2].mxu1 }
 0x56c   :  { %v337_v35 = vpack.c.bf16 %v333_v33, %v330_v30  ;;  %v2480_v36 = vpop.f32.mrb[3].mxu1 }
 0x56e   :  { %2502 = vmatmul.mubr.msk.bf16.vlgmr.msra.gmra.mrb[8].mxu1 %vm218_vm5, %v337_v35 }
 0x56f   :  { %2513 = vmatprep.mubr.msk.bf16.mxu1 %vm2943_vm1, %v2942_v0 }
 0x571   :  { %v452_v37 = vpop.f32.mrb[4].mxu1 }
 0x572   :  { %v2491_v38 = vpop.f32.mrb[5].mxu1 }
 0x573   :  { %v455_v40 = vpop.f32.mrb[6].mxu1 }
 0x574   :  { %v459_v41 = vpack.c.bf16 %v455_v40, %v452_v37  ;;  %v2492_v42 = vpop.f32.mrb[7].mxu1 }
 0x576   :  { %2496 = vmatmul.mubr.msk.bf16.vlgmr.msra.gmra.mrb[16].mxu0 %vm218_vm5, %v459_v41 }
 0x577   :  { %2506 = vmatpush3.bf16.xpose.msra.mxu0 %v563_v43  ;;  %2507 = vmatprep.mubr.msk.bf16.mxu0 %vm2943_vm1, %v2942_v0 }
 0x578   :  { %2517 = vmatprep.subr.bf16.mxu0 %v2942_v0 }
 0x57e   :  { %2508 = vmatmul.mubr.msk.bf16.vlgmr.msra.gmra.mrb[20].mxu0 %vm218_vm5, %v556_v44 }
 0x57f   :  { %2519 = vmatprep.mubr.msk.bf16.mxu0 %vm2943_vm1, %v2942_v0  ;;  %2518 = vmatpush3.bf16.msra.mxu0 %v681_v24 }
 0x580   :  { %2529 = vmatprep.subr.bf16.mxu0 %v2942_v0 }
 0x641   :  { %v548_v45 = vpop.f32.mrb[8].mxu1 }
 0x642   :  { %v2503_v46 = vpop.f32.mrb[9].mxu1 }
 0x643   :  { %v551_v47 = vpop.f32.mrb[10].mxu1 }
 0x644   :  { %v2504_v48 = vpop.f32.mrb[11].mxu1 }
 0x649   :  { %v501_v49 = vpop.f32.mrb[16].mxu0 }
 0x64a   :  { %v3133_v50 = vadd.f32 %v548_v45, %v501_v49  ;;  %v2497_v51 = vpop.f32.mrb[17].mxu0 }
 0x64b   :  { %v504_v52 = vpop.f32.mrb[18].mxu0 }
 0x64c   :  { %v3135_v53 = vadd.f32 %v551_v47, %v504_v52  ;;  %v2498_v54 = vpop.f32.mrb[19].mxu0 }
 0x651   :  { %v599_v55 = vpop.f32.mrb[20].mxu0 }
 0x652   :  { %v600_v56 = vadd.f32 %v599_v55, %v3086_v32  ;;  %v2509_v57 = vpop.f32.mrb[21].mxu0 }
 0x653   :  { %v602_v58 = vpop.f32.mrb[22].mxu0 }
 0x654   :  { %v603_v59 = vadd.f32 %v602_v58, %v3088_v34  ;;  %v2510_v60 = vpop.f32.mrb[23].mxu0  ;;  %v606_v61 = vsel %vm266_vm6, %v600_v56, -inf }
 0x655   :  { %607 = vmax.xlane.f32.xlu1 %v606_v61 }
 0x656   :  { %v609_v62 = vsel %vm266_vm6, %v603_v59, -inf }
 0x657   :  { %610 = vmax.xlane.f32.xlu0 %v609_v62 }
 0x6e2   :  { %v608_v63 = vpop.xlane.xlu1 %607 }
 0x6e3   :  { %v612_v1 = vsub.f32 %v600_v56, %v608_v63 }
 0x6e4   :  { %v611_v2 = vpop.xlane.xlu0 %610 }
 0x6e5   :  { %v614_v3 = vmul.f32 1.442695, %v612_v1  ;;  %v613_v4 = vsub.f32 %v603_v59, %v611_v2 }
 0x6e7   :  { %2750 = vpow2.f32 %v614_v3  ;;  %v616_v5 = vmul.f32 1.442695, %v613_v4 }
 0x6e9   :  { %2752 = vpow2.f32 %v616_v5 }
 0x6f1   :  { %v2751_v6 = vpop.eup %2750 }
 0x6f2   :  { %v618_v7 = vsel %vm266_vm6, %v2751_v6, 0.0 }
 0x6f3   :  { %v2753_v8 = vpop.eup %2752  ;;  %619 = vadd.xlane.f32.xlu0 %v618_v7 }
 0x6f4   :  { %v621_v9 = vsel %vm266_vm6, %v2753_v8, 0.0 }
 0x6f5   :  { %622 = vadd.xlane.f32.xlu1 %v621_v9  ;;  %v2316_v9 = vld [vmem:[#allocation8 + $0x10] ss:$0 sm:$0xff] }
 0x706   :  { %728 = vrot.lane.b32.xlu1 %v3067_v26, %s2951_s16 }
 0x709   :  { %629 = vrot.lane.b32.xlu0 %v3067_v26, %s2952_s17 }
 0x70a   :  { %726 = vrot.lane.b32.xlu1 %v3067_v26, %s2953_s19 }
 0x780   :  { %v620_v10 = vpop.xlane.xlu0 %619 }
 0x781   :  { %2754 = vrcp.f32 %v620_v10 }
 0x782   :  { %v623_v11 = vpop.xlane.xlu1 %622 }
 0x783   :  { %2756 = vrcp.f32 %v623_v11 }
 0x784   :  { %v630_v12 = vpop.permute.xlu0 %629 }
 0x785   :  { %2512 = vmatpush3.bf16.msra.mxu1 %v630_v12 }
 0x786   :  { %2523 = vmatprep.subr.bf16.mxu1 %v2942_v0  ;;  %v729_v19 = vpop.permute.xlu1 %728 }
 0x787   :  { %v734_v21 = vsel %vm218_vm5, %v729_v19, 0 }
 0x78a   :  { %v727_v22 = vpop.permute.xlu1 %726 }
 0x78b   :  { %v2755_v13 = vpop.eup %2754 }
 0x78c   :  { %v626_v17 = vmul.f32 %v2755_v13, %v2751_v6 }
 0x78d   :  { %v2757_v14 = vpop.eup %2756 }
 0x78e   :  { %v627_v18 = vmul.f32 %v2757_v14, %v2753_v8 }
 0x790   :  { %v628_v20 = vpack.c.bf16 %v627_v18, %v626_v17 }
 0x792   :  { %2514 = vmatmul.mubr.msk.bf16.vlgmr.msra.gmra.mrb[12].mxu1 %vm266_vm6, %v628_v20 }
 0x793   :  { %2524 = vmatpush3.bf16.xpose.msra.mxu1 %v734_v21  ;;  %2525 = vmatprep.mubr.msk.bf16.mxu1 %vm2943_vm1, %v2942_v0 }
 0x794   :  { %2535 = vmatprep.subr.bf16.mxu1 %v2942_v0 }
 0x79a   :  { %2526 = vmatmul.mubr.msk.bf16.vlgmr.msra.gmra.mrb[16].mxu1 %vm218_vm5, %v727_v22 }
 0x79b   :  { %2537 = vmatprep.mubr.msk.bf16.mxu1 %vm2943_vm1, %v2942_v0 }
 0x865   :  { %v669_v25 = vpop.f32.mrb[12].mxu1 }
 0x866   :  { %v2515_v27 = vpop.f32.mrb[13].mxu1 }
 0x867   :  { %v672_v28 = vpop.f32.mrb[14].mxu1 }
 0x868   :  { %v676_v29 = vpack.c.bf16 %v672_v28, %v669_v25  ;;  %v2516_v30 = vpop.f32.mrb[15].mxu1 }
 0x86a   :  { %2520 = vmatmul.mubr.msk.bf16.vlgmr.msra.gmra.mrb[24].mxu0 %vm218_vm5, %v676_v29 }
 0x86b   :  { %2531 = vmatprep.mubr.msk.bf16.mxu0 %vm2943_vm1, %v2942_v0 }
 0x86d   :  { %v770_v31 = vpop.f32.mrb[16].mxu1 }
 0x86e   :  { %v771_v33 = vadd.f32 %v770_v31, %v3086_v32  ;;  %v2527_v35 = vpop.f32.mrb[17].mxu1 }
 0x86f   :  { %v773_v36 = vpop.f32.mrb[18].mxu1  ;;  %v2710_v35 = vld [vmem:[#allocation7 + $0x28] sm:$0xff]  }
 0x870   :  { %v774_v37 = vadd.f32 %v773_v36, %v3088_v34  ;;  %v2528_v38 = vpop.f32.mrb[19].mxu1  ;;  %v777_v39 = vsel %vm266_vm6, %v771_v33, -inf  ;;  %v2712_v36 = vld [vmem:[#allocation7 + $0x38] sm:$0xff]  }
 0x871   :  { %778 = vmax.xlane.f32.xlu0 %v777_v39  ;;  %v2714_v38 = vld [vmem:[#allocation7 + $0x48] sm:$0xff]   ;;  %v2715_v39 = vld [vmem:[#allocation7 + $0x50] sm:$0xff]  }
 0x872   :  { %v780_v40 = vsel %vm266_vm6, %v774_v37, -inf }
 0x873   :  { %781 = vmax.xlane.f32.xlu1 %v780_v40  ;;  %v2716_v40 = vld [vmem:[#allocation7 + $0x58] sm:$0xff]  }
 0x884   :  { %800 = vrot.lane.b32.xlu1 %v3067_v26, %s2954_s20  ;;  %v213_v26 = vld [vmem:[#allocation7 + $0x24] sm:$0xf] }
 0x885   :  { %v852_v54 = vsel %vm463_vm7, %v213_v26, 0 }
 0x886   :  { %2536 = vmatpush3.bf16.msra.mxu1 %v852_v54 }
 0x887   :  { %2549 = vmatprep.subr.bf16.mxu1 %v2942_v0 }
 0x8fe   :  { %v779_v41 = vpop.xlane.xlu0 %778 }
 0x8ff   :  { %v783_v42 = vsub.f32 %v771_v33, %v779_v41  ;;  %v2717_v41 = vld [vmem:[#allocation7 + $0x60] sm:$0xff]  }
 0x900   :  { %v782_v43 = vpop.xlane.xlu1 %781 }
 0x901   :  { %v785_v44 = vmul.f32 1.442695, %v783_v42  ;;  %v784_v45 = vsub.f32 %v774_v37, %v782_v43  ;;  %v2713_v37 = vld [vmem:[#allocation7 + $0x40] sm:$0xff]  }
 0x903   :  { %2758 = vpow2.f32 %v785_v44  ;;  %v787_v46 = vmul.f32 1.442695, %v784_v45 }
 0x904   :  { %v801_v47 = vpop.permute.xlu1 %800 }
 0x905   :  { %2760 = vpow2.f32 %v787_v46  ;;  %2530 = vmatpush3.bf16.msra.mxu0 %v801_v47 }
 0x906   :  { %2541 = vmatprep.subr.bf16.mxu0 %v2942_v0 }
 0x90d   :  { %v2759_v48 = vpop.eup %2758 }
 0x90e   :  { %v789_v49 = vsel %vm266_vm6, %v2759_v48, 0.0 }
 0x90f   :  { %v2761_v51 = vpop.eup %2760  ;;  %790 = vadd.xlane.f32.xlu0 %v789_v49 }
 0x910   :  { %v792_v52 = vsel %vm266_vm6, %v2761_v51, 0.0 }
 0x913   :  { %793 = vadd.xlane.f32.xlu0 %v792_v52 }
 0x93d   :  { %v717_v55 = vpop.f32.mrb[24].mxu0 }
 0x93e   :  { %v724_v56 = vadd.f32 %v717_v55, %v3133_v50  ;;  %v2521_v57 = vpop.f32.mrb[25].mxu0  ;;  %v2318_v55 = vld [vmem:[#allocation8 + $0x20] ss:$0 sm:$0xff] }
 0x93f   :  { %v720_v58 = vpop.f32.mrb[26].mxu0 }
 0x940   :  { %v725_v59 = vadd.f32 %v720_v58, %v3135_v53  ;;  %v2522_v60 = vpop.f32.mrb[27].mxu0 }
 0x941   :  { %v2718_v60 = vld [vmem:[#allocation7 + $0x68] sm:$0xff]  }
 0x99c   :  { %v791_v61 = vpop.xlane.xlu0 %790 }
 0x99d   :  { %2762 = vrcp.f32 %v791_v61  ;;  %v2719_v61 = vld [vmem:[#allocation7 + $0x70] sm:$0xff]  }
 0x9a0   :  { %v794_v62 = vpop.xlane.xlu0 %793 }
 0x9a1   :  { %2764 = vrcp.f32 %v794_v62  ;;  %v2319_v62 = vld [vmem:[#allocation8 + $0x28] ss:$0 sm:$0xff] }
 0x9a7   :  { %v2763_v63 = vpop.eup %2762 }
 0x9a8   :  { %v797_v2 = vmul.f32 %v2763_v63, %v2759_v48 }
 0x9ab   :  { %v2765_v1 = vpop.eup %2764 }
 0x9ac   :  { %v798_v3 = vmul.f32 %v2765_v1, %v2761_v51  ;;  %v2317_v51 = vld [vmem:[#allocation8 + $0x18] ss:$0 sm:$0xff] }
 0x9ae   :  { %v799_v4 = vpack.c.bf16 %v798_v3, %v797_v2 }
 0x9b0   :  { %2532 = vmatmul.mubr.msk.bf16.vlgmr.msra.gmra.mrb[28].mxu0 %vm266_vm6, %v799_v4 }
 0x9b1   :  { %2545 = vmatprep.mubr.msk.bf16.mxu0 %vm2943_vm1, %v2942_v0  ;;  %2542 = vmatpush3.bf16.msra.mxu0 %v2710_v35 }
 0x9b2   :  { %2543 = vmatprep.subr.bf16.mxu0 %v2942_v0 }
 0xa83   :  { %v840_v50 = vpop.f32.mrb[28].mxu0 }
 0xa84   :  { %v2533_v5 = vpop.f32.mrb[29].mxu0 }
 0xa85   :  { %v843_v6 = vpop.f32.mrb[30].mxu0 }
 0xa86   :  { %v847_v7 = vpack.c.bf16 %v843_v6, %v840_v50  ;;  %v2534_v53 = vpop.f32.mrb[31].mxu0 }
 0xa87   :  { %v2323_v53 = vld [vmem:[#allocation8 + $0x30] ss:$0 sm:$0xff] }
 0xa88   :  { %2538 = vmatmul.mubr.msk.bf16.vlgmr.msra.gmra.mrb[20].mxu1 %vm218_vm5, %v847_v7 }
 0xa89   :  { %2565 = vmatprep.mubr.msk.bf16.mxu1 %vm2943_vm1, %v2942_v0  ;;  %2550 = vmatpush3.bf16.msra.mxu1 %v2712_v36 }
 0xa8a   :  { %2551 = vmatprep.subr.bf16.mxu1 %v2942_v0 }
 0xa8d   :  { %2552 = vmatpush3.bf16.msra.mxu1 %v2713_v37 }
 0xa8e   :  { %2553 = vmatprep.subr.bf16.mxu1 %v2942_v0 }
 0xa91   :  { %2554 = vmatpush3.bf16.msra.mxu1 %v2714_v38 }
 0xa92   :  { %2555 = vmatprep.subr.bf16.mxu1 %v2942_v0 }
 0xa95   :  { %2556 = vmatpush3.bf16.msra.mxu1 %v2715_v39 }
 0xa96   :  { %2557 = vmatprep.subr.bf16.mxu1 %v2942_v0 }
 0xa99   :  { %2558 = vmatpush3.bf16.msra.mxu1 %v2716_v40 }
 0xa9a   :  { %2559 = vmatprep.subr.bf16.mxu1 %v2942_v0 }
 0xa9d   :  { %2560 = vmatpush3.bf16.msra.mxu1 %v2717_v41  ;;  %v2332_v41 = vld [vmem:[#allocation8 + $0x38] ss:$0 sm:$0xff] }
 0xa9e   :  { %2561 = vmatprep.subr.bf16.mxu1 %v2942_v0 }
 0xaa1   :  { %2562 = vmatpush3.bf16.msra.mxu1 %v2718_v60 }
 0xaa2   :  { %2563 = vmatprep.subr.bf16.mxu1 %v2942_v0 }
 0xaa5   :  { %2564 = vmatpush3.bf16.msra.mxu1 %v2719_v61 }
 0xaa6   :  { %2595 = vmatprep.subr.bf16.mxu1 %v2942_v0 }
 0xb5b   :  { %v888_v8 = vpop.f32.mrb[20].mxu1 }
 0xb5c   :  { %v895_v10 = vadd.f32 %v888_v8, %v724_v56  ;;  %v2539_v11 = vpop.f32.mrb[21].mxu1 }
 0xb5d   :  { %v891_v12 = vpop.f32.mrb[22].mxu1 }
 0xb5e   :  { %v902_v13 = vadd.f32 %v2316_v9, %v895_v10  ;;  %v896_v14 = vadd.f32 %v891_v12, %v725_v59  ;;  %v2540_v17 = vpop.f32.mrb[23].mxu1 }
 0xb60   :  { %v903_v18 = vadd.f32 %v2316_v9, %v896_v14  ;;  %v904_v19 = vadd.f32 %v902_v13, %v3058_v15 }
 0xb62   :  { %v908_v20 = vsel %vm165_vm4, %v904_v19, 0.0  ;;  %v905_v21 = vadd.f32 %v903_v18, %v3060_v16  ;;  %v2711_v16 = vld [vmem:[#allocation7 + $0x30] sm:$0xff]  }
 0xb63   :  { %909 = vadd.xlane.f32.xlu0 %v908_v20  ;;  %2544 = vmatpush3.bf16.msra.mxu0 %v2711_v16 }
 0xb64   :  { %v911_v22 = vsel %vm165_vm4, %v905_v21, 0.0  ;;  %2569 = vmatprep.subr.bf16.mxu0 %v2942_v0 }
 0xb67   :  { %912 = vadd.xlane.f32.xlu0 %v911_v22 }
 0xbf0   :  { %v910_v23 = vpop.xlane.xlu0 %909 }
 0xbf1   :  { %v915_v24 = vmul.f32 0.03125, %v910_v23 }
 0xbf3   :  { %v917_v25 = vsub.f32 %v904_v19, %v915_v24 }
 0xbf4   :  { %v913_v27 = vpop.xlane.xlu0 %912 }
 0xbf5   :  { %v916_v28 = vmul.f32 0.03125, %v913_v27  ;;  %v919_v29 = vmul.f32 %v917_v25, %v917_v25 }
 0xbf7   :  { %v918_v30 = vsub.f32 %v905_v21, %v916_v28  ;;  %v921_v31 = vsel %vm165_vm4, %v919_v29, 0.0 }
 0xbf8   :  { %922 = vadd.xlane.f32.xlu0 %v921_v31  ;;  %v2720_v31 = vld [vmem:[#allocation7 + $0x78] sm:$0xff]  }
 0xbf9   :  { %v920_v33 = vmul.f32 %v918_v30, %v918_v30 }
 0xbfb   :  { %v924_v15 = vsel %vm165_vm4, %v920_v33, 0.0  ;;  %v2721_v33 = vld [vmem:[#allocation7 + $0x80] sm:$0xff]  }
 0xbfc   :  { %925 = vadd.xlane.f32.xlu0 %v924_v15 }
 0xc85   :  { %v923_v42 = vpop.xlane.xlu0 %922 }
 0xc86   :  { %v927_v43 = vmul.f32 0.03125, %v923_v42 }
 0xc88   :  { %v929_v44 = vadd.f32 1e-05, %v927_v43 }
 0xc89   :  { %v926_v45 = vpop.xlane.xlu0 %925 }
 0xc8a   :  { %2766 = vrsqrt.f32 %v929_v44  ;;  %v928_v46 = vmul.f32 0.03125, %v926_v45  ;;  %v2333_v45 = vld [vmem:[#allocation8 + $0x40] ss:$0 sm:$0xff] }
 0xc8c   :  { %v930_v47 = vadd.f32 1e-05, %v928_v46 }
 0xc8e   :  { %2768 = vrsqrt.f32 %v930_v47 }
 0xc94   :  { %v2767_v48 = vpop.eup %2766 }
 0xc95   :  { %v933_v49 = vmul.f32 %v2767_v48, %v917_v25 }
 0xc97   :  { %v939_v26 = vmul.f32 %v2317_v51, %v933_v49 }
 0xc98   :  { %v2769_v52 = vpop.eup %2768 }
 0xc99   :  { %v934_v54 = vmul.f32 %v2769_v52, %v918_v30  ;;  %v945_v57 = vadd.f32 %v2318_v55, %v939_v26 }
 0xc9b   :  { %v940_v56 = vmul.f32 %v2317_v51, %v934_v54  ;;  %v2334_v51 = vld [vmem:[#allocation8 + $0x48] ss:$0 sm:$0xff] }
 0xc9d   :  { %v946_v58 = vadd.f32 %v2318_v55, %v940_v56 }
 0xc9f   :  { %v951_v59 = vpack.c.bf16 %v946_v58, %v945_v57 }
 0xca1   :  { %2546 = vmatmul.mubr.msk.bf16.vlgmr.msra.gmra.mrb[32].mxu0 %vm165_vm4, %v951_v59 }
 0xca2   :  { %2573 = vmatprep.mubr.msk.bf16.mxu0 %vm2943_vm1, %v2942_v0  ;;  %2570 = vmatpush3.bf16.msra.mxu0 %v2720_v31 }
 0xca3   :  { %2571 = vmatprep.subr.bf16.mxu0 %v2942_v0 }
 0xca6   :  { %2572 = vmatpush3.bf16.msra.mxu0 %v2721_v33 }
 0xca7   :  { %2577 = vmatprep.subr.bf16.mxu0 %v2942_v0 }
 0xd74   :  { %v1006_v63 = vpop.f32.mrb[32].mxu0 }
 0xd75   :  { %v1007_v1 = vadd.f32 %v2319_v62, %v1006_v63  ;;  %v2547_v2 = vpop.f32.mrb[33].mxu0 }
 0xd76   :  { %v1009_v3 = vpop.f32.mrb[34].mxu0 }
 0xd77   :  { %v1010_v4 = vadd.f32 %v2319_v62, %v1009_v3  ;;  %v2548_v50 = vpop.f32.mrb[35].mxu0  ;;  %v1013_v5 = vmax.f32 %v1007_v1, 0.0 }
 0xd79   :  { %v1014_v6 = vmax.f32 %v1010_v4, 0.0 }
 0xd7b   :  { %v1031_v7 = vpack.c.bf16 %v1014_v6, %v1013_v5 }
 0xd7d   :  { %2566 = vmatmul.mubr.bf16.vlgmr.msra.gmra.mrb[24].mxu1 %v1031_v7 }
 0xd7e   :  { %2597 = vmatprep.mubr.msk.bf16.mxu1 %vm2943_vm1, %v2942_v0 }
 0xe50   :  { %v1119_v8 = vpop.f32.mrb[24].mxu1 }
 0xe51   :  { %v1120_v9 = vadd.f32 %v2323_v53, %v1119_v8  ;;  %v2567_v10 = vpop.f32.mrb[25].mxu1 }
 0xe52   :  { %v1122_v11 = vpop.f32.mrb[26].mxu1 }
 0xe53   :  { %v1123_v12 = vadd.f32 %v2323_v53, %v1122_v11  ;;  %v2568_v13 = vpop.f32.mrb[27].mxu1  ;;  %v1126_v14 = vadd.f32 %v1120_v9, %v945_v57 }
 0xe55   :  { %v1130_v17 = vsel %vm165_vm4, %v1126_v14, 0.0  ;;  %v1127_v18 = vadd.f32 %v1123_v12, %v946_v58 }
 0xe56   :  { %1131 = vadd.xlane.f32.xlu1 %v1130_v17 }
 0xe57   :  { %v1133_v19 = vsel %vm165_vm4, %v1127_v18, 0.0 }
 0xe58   :  { %1134 = vadd.xlane.f32.xlu0 %v1133_v19 }
 0xee3   :  { %v1132_v20 = vpop.xlane.xlu1 %1131 }
 0xee4   :  { %v1136_v21 = vmul.f32 0.03125, %v1132_v20 }
 0xee5   :  { %v1135_v22 = vpop.xlane.xlu0 %1134 }
 0xee6   :  { %v1138_v23 = vsub.f32 %v1126_v14, %v1136_v21  ;;  %v1137_v24 = vmul.f32 0.03125, %v1135_v22 }
 0xee8   :  { %v1139_v25 = vsub.f32 %v1127_v18, %v1137_v24  ;;  %v1140_v27 = vmul.f32 %v1138_v23, %v1138_v23 }
 0xeea   :  { %v1142_v28 = vsel %vm165_vm4, %v1140_v27, 0.0  ;;  %v1141_v29 = vmul.f32 %v1139_v25, %v1139_v25 }
 0xeeb   :  { %1143 = vadd.xlane.f32.xlu0 %v1142_v28 }
 0xeec   :  { %v1145_v30 = vsel %vm165_vm4, %v1141_v29, 0.0 }
 0xeef   :  { %1146 = vadd.xlane.f32.xlu0 %v1145_v30 }
 0xf78   :  { %v1144_v15 = vpop.xlane.xlu0 %1143 }
 0xf79   :  { %v1148_v35 = vmul.f32 0.03125, %v1144_v15 }
 0xf7b   :  { %v1150_v16 = vadd.f32 1e-05, %v1148_v35 }
 0xf7c   :  { %v1147_v36 = vpop.xlane.xlu0 %1146 }
 0xf7d   :  { %2770 = vrsqrt.f32 %v1150_v16  ;;  %v1149_v37 = vmul.f32 0.03125, %v1147_v36 }
 0xf7f   :  { %v1151_v38 = vadd.f32 1e-05, %v1149_v37 }
 0xf81   :  { %2772 = vrsqrt.f32 %v1151_v38 }
 0xf87   :  { %v2771_v39 = vpop.eup %2770 }
 0xf88   :  { %v1154_v40 = vmul.f32 %v2771_v39, %v1138_v23 }
 0xf8a   :  { %v1160_v43 = vmul.f32 %v2332_v41, %v1154_v40 }
 0xf8b   :  { %v2773_v42 = vpop.eup %2772 }
 0xf8c   :  { %v1155_v44 = vmul.f32 %v2773_v42, %v1139_v25  ;;  %v3209_v47 = vadd.f32 %v2333_v45, %v1160_v43 }
 0xf8e   :  { %v1161_v46 = vmul.f32 %v2332_v41, %v1155_v44 }
 0xf90   :  { %v3211_v48 = vadd.f32 %v2333_v45, %v1161_v46 }
 0xf92   :  { %v1172_v49 = vpack.c.bf16 %v3211_v48, %v3209_v47 }
 0xf94   :  { %2574 = vmatmul.mubr.msk.bf16.vlgmr.msra.gmra.mrb[36].mxu0 %vm165_vm4, %v1172_v49 }
 0xf95   :  { %2579 = vmatprep.mubr.msk.bf16.mxu0 %vm2943_vm1, %v2942_v0 }
0x1067   :  { %v1227_v52 = vpop.f32.mrb[36].mxu0 }
0x1068   :  { %v2575_v26 = vpop.f32.mrb[37].mxu0  ;;  %v1228_v55 = vadd.f32 %v2334_v51, %v1227_v52  ;;  %v1235_v52 = vld [vmem:[#allocation7 + $0x8c] sm:$0xf] }
0x1069   :  { %v1230_v54 = vpop.f32.mrb[38].mxu0  ;;  %v1486_v26 = vsel %vm463_vm7, %v1235_v52, 0 }
0x106a   :  { %v1231_v56 = vadd.f32 %v2334_v51, %v1230_v54  ;;  %v2576_v57 = vpop.f32.mrb[39].mxu0 }
0x106c   :  { %v3218_v58 = vpack.c.bf16 %v1231_v56, %v1228_v55 }
0x106e   :  { %1240 = vrot.lane.b32.xlu0 %v3218_v58, %s2946_s27 }
0x10e0   :  { %v1241_v59 = vpop.permute.xlu0 %1240 }
0x10e1   :  { %v1246_v60 = vsel %vm218_vm5, %v1241_v59, 0 }
0x10e2   :  { %2578 = vmatpush3.bf16.xpose.msra.mxu0 %v1246_v60  ;;  %v1234_v60 = vld [vmem:[#allocation7 + $0x88] sm:$0xf] }
0x10e3   :  { %2583 = vmatprep.subr.bf16.mxu0 %v2942_v0 }
0x10e9   :  { %2580 = vmatmul.mubr.msk.bf16.vlgmr.msra.gmra.mrb[40].mxu0 %vm218_vm5, %v3218_v58 }
0x10ea   :  { %2585 = vmatprep.mubr.msk.bf16.mxu0 %vm2943_vm1, %v2942_v0 }
0x11bc   :  { %v1282_v61 = vpop.f32.mrb[40].mxu0 }
0x11bd   :  { %v1283_v62 = vadd.f32 %v1282_v61, %v3086_v32  ;;  %v2581_v63 = vpop.f32.mrb[41].mxu0 }
0x11be   :  { %v1285_v1 = vpop.f32.mrb[42].mxu0 }
0x11bf   :  { %v1286_v2 = vadd.f32 %v1285_v1, %v3088_v34  ;;  %v2582_v3 = vpop.f32.mrb[43].mxu0  ;;  %v1289_v4 = vsel %vm266_vm6, %v1283_v62, -inf  ;;  %v1533_v1 = vsel %vm463_vm7, %v1234_v60, 0 }
0x11c0   :  { %1290 = vmax.xlane.f32.xlu0 %v1289_v4 }
0x11c1   :  { %v1292_v50 = vsel %vm266_vm6, %v1286_v2, -inf }
0x11c2   :  { %1293 = vmax.xlane.f32.xlu1 %v1292_v50 }
0x11d3   :  { %1312 = vrot.lane.b32.xlu1 %v3218_v58, %s2939_s0 }
0x11d6   :  { %1360 = vrot.lane.b32.xlu0 %v3218_v58, %s2945_s3 }
0x124d   :  { %v1291_v5 = vpop.xlane.xlu0 %1290 }
0x124e   :  { %v1295_v6 = vsub.f32 %v1283_v62, %v1291_v5 }
0x124f   :  { %v1294_v7 = vpop.xlane.xlu1 %1293 }
0x1250   :  { %v1297_v53 = vmul.f32 1.442695, %v1295_v6  ;;  %v1296_v8 = vsub.f32 %v1286_v2, %v1294_v7 }
0x1251   :  { %v1361_v27 = vpop.permute.xlu0 %1360 }
0x1252   :  { %2774 = vpow2.f32 %v1297_v53  ;;  %v1299_v9 = vmul.f32 1.442695, %v1296_v8 }
0x1253   :  { %v1313_v10 = vpop.permute.xlu1 %1312 }
0x1254   :  { %2776 = vpow2.f32 %v1299_v9  ;;  %2584 = vmatpush3.bf16.msra.mxu0 %v1313_v10 }
0x1255   :  { %2589 = vmatprep.subr.bf16.mxu0 %v2942_v0 }
0x125c   :  { %v2775_v11 = vpop.eup %2774 }
0x125d   :  { %v1301_v12 = vsel %vm266_vm6, %v2775_v11, 0.0 }
0x125e   :  { %v2777_v13 = vpop.eup %2776  ;;  %1302 = vadd.xlane.f32.xlu1 %v1301_v12 }
0x125f   :  { %v1304_v14 = vsel %vm266_vm6, %v2777_v13, 0.0 }
0x1262   :  { %1305 = vadd.xlane.f32.xlu1 %v1304_v14 }
0x1273   :  { %1362 = vrot.lane.b32.xlu1 %v3218_v58, %s2947_s28 }
0x12eb   :  { %v1303_v17 = vpop.xlane.xlu1 %1302 }
0x12ec   :  { %2778 = vrcp.f32 %v1303_v17 }
0x12ef   :  { %v1306_v18 = vpop.xlane.xlu1 %1305 }
0x12f0   :  { %2780 = vrcp.f32 %v1306_v18 }
0x12f3   :  { %v1363_v23 = vpop.permute.xlu1 %1362 }
0x12f4   :  { %v1368_v25 = vsel %vm218_vm5, %v1363_v23, 0 }
0x12f6   :  { %v2779_v19 = vpop.eup %2778 }
0x12f7   :  { %v1309_v21 = vmul.f32 %v2779_v19, %v2775_v11 }
0x12fa   :  { %v2781_v20 = vpop.eup %2780 }
0x12fb   :  { %v1310_v22 = vmul.f32 %v2781_v20, %v2777_v13 }
0x12fd   :  { %v1311_v24 = vpack.c.bf16 %v1310_v22, %v1309_v21  ;;  %v2814_v21 = vld [vmem:[#allocation5] sm:$0xff] }
0x12ff   :  { %2586 = vmatmul.mubr.msk.bf16.vlgmr.msra.gmra.mrb[44].mxu0 %vm266_vm6, %v1311_v24 }
0x1300   :  { %2590 = vmatpush3.bf16.xpose.msra.mxu0 %v1368_v25  ;;  %2591 = vmatprep.mubr.msk.bf16.mxu0 %vm2943_vm1, %v2942_v0  ;;  %v2815_v25 = vld [vmem:[#allocation5 + $0x8] sm:$0xff] }
0x1301   :  { %2601 = vmatprep.subr.bf16.mxu0 %v2942_v0 }
0x1307   :  { %2592 = vmatmul.mubr.msk.bf16.vlgmr.msra.gmra.mrb[48].mxu0 %vm218_vm5, %v1361_v27 }
0x1308   :  { %2603 = vmatprep.mubr.msk.bf16.mxu0 %vm2943_vm1, %v2942_v0  ;;  %2602 = vmatpush3.bf16.msra.mxu0 %v1486_v26  ;;  %v1236_v26 = vld [vmem:[#allocation7 + $0x90] sm:$0xf] }
0x1309   :  { %2613 = vmatprep.subr.bf16.mxu0 %v2942_v0 }
0x13d2   :  { %v1352_v28 = vpop.f32.mrb[44].mxu0 }
0x13d3   :  { %v2587_v29 = vpop.f32.mrb[45].mxu0 }
0x13d4   :  { %v1355_v30 = vpop.f32.mrb[46].mxu0 }
0x13d5   :  { %v1359_v31 = vpack.c.bf16 %v1355_v30, %v1352_v28  ;;  %v2588_v33 = vpop.f32.mrb[47].mxu0 }
0x13da   :  { %v1404_v15 = vpop.f32.mrb[48].mxu0 }
0x13db   :  { %v1405_v35 = vadd.f32 %v1404_v15, %v3086_v32  ;;  %v2593_v16 = vpop.f32.mrb[49].mxu0 }
0x13dc   :  { %v1407_v36 = vpop.f32.mrb[50].mxu0 }
0x13dd   :  { %v1408_v37 = vadd.f32 %v1407_v36, %v3088_v34  ;;  %v2594_v38 = vpop.f32.mrb[51].mxu0  ;;  %v1411_v39 = vsel %vm266_vm6, %v1405_v35, -inf }
0x13de   :  { %1412 = vmax.xlane.f32.xlu1 %v1411_v39 }
0x13df   :  { %v1414_v40 = vsel %vm266_vm6, %v1408_v37, -inf }
0x13e0   :  { %1415 = vmax.xlane.f32.xlu0 %v1414_v40 }
0x13f6   :  { %1578 = vrot.lane.b32.xlu0 %v3218_v58, %s2949_s14 }
0x146b   :  { %v1413_v41 = vpop.xlane.xlu1 %1412 }
0x146c   :  { %v1417_v42 = vsub.f32 %v1405_v35, %v1413_v41 }
0x146d   :  { %v1416_v43 = vpop.xlane.xlu0 %1415 }
0x146e   :  { %v1419_v44 = vmul.f32 1.442695, %v1417_v42  ;;  %v1418_v45 = vsub.f32 %v1408_v37, %v1416_v43 }
0x1470   :  { %2782 = vpow2.f32 %v1419_v44  ;;  %v1421_v32 = vmul.f32 1.442695, %v1418_v45 }
0x1471   :  { %v1579_v4 = vpop.permute.xlu0 %1578 }
0x1472   :  { %2784 = vpow2.f32 %v1421_v32  ;;  %v1584_v7 = vsel %vm218_vm5, %v1579_v4, 0 }
0x147a   :  { %v2783_v46 = vpop.eup %2782 }
0x147b   :  { %v1423_v34 = vsel %vm266_vm6, %v2783_v46, 0.0 }
0x147c   :  { %v2785_v49 = vpop.eup %2784  ;;  %1424 = vadd.xlane.f32.xlu1 %v1423_v34 }
0x147d   :  { %v1426_v51 = vsel %vm266_vm6, %v2785_v49, 0.0 }
0x1480   :  { %1427 = vadd.xlane.f32.xlu1 %v1426_v51 }
0x1491   :  { %1434 = vrot.lane.b32.xlu1 %v3218_v58, %s2948_s13 }
0x1495   :  { %1576 = vrot.lane.b32.xlu1 %v3218_v58, %s2950_s15 }
0x1509   :  { %v1425_v54 = vpop.xlane.xlu1 %1424 }
0x150a   :  { %2786 = vrcp.f32 %v1425_v54  ;;  %v1702_v54 = vsel %vm463_vm7, %v1236_v26, 0 }
0x150d   :  { %v1428_v55 = vpop.xlane.xlu1 %1427 }
0x150e   :  { %2788 = vrcp.f32 %v1428_v55 }
0x1511   :  { %v1435_v56 = vpop.permute.xlu1 %1434 }
0x1512   :  { %2596 = vmatpush3.bf16.msra.mxu1 %v1435_v56 }
0x1513   :  { %2607 = vmatprep.subr.bf16.mxu1 %v2942_v0 }
0x1514   :  { %v2787_v57 = vpop.eup %2786 }
0x1515   :  { %v1431_v61 = vmul.f32 %v2787_v57, %v2783_v46  ;;  %v1577_v11 = vpop.permute.xlu1 %1576 }
0x1518   :  { %v2789_v59 = vpop.eup %2788 }
0x1519   :  { %v1432_v62 = vmul.f32 %v2789_v59, %v2785_v49 }
0x151b   :  { %v1433_v63 = vpack.c.bf16 %v1432_v62, %v1431_v61 }
0x151d   :  { %2598 = vmatmul.mubr.msk.bf16.vlgmr.msra.gmra.mrb[28].mxu1 %vm266_vm6, %v1433_v63 }
0x151e   :  { %2608 = vmatpush3.bf16.msra.mxu1 %v1533_v1  ;;  %2609 = vmatprep.mubr.msk.bf16.mxu1 %vm2943_vm1, %v2942_v0 }
0x151f   :  { %2619 = vmatprep.subr.bf16.mxu1 %v2942_v0 }
0x1525   :  { %2610 = vmatmul.mubr.msk.bf16.vlgmr.msra.gmra.mrb[32].mxu1 %vm218_vm5, %v1359_v31 }
0x1526   :  { %2621 = vmatprep.mubr.msk.bf16.mxu1 %vm2943_vm1, %v2942_v0 }
0x15f0   :  { %v1474_v2 = vpop.f32.mrb[28].mxu1 }
0x15f1   :  { %v2599_v3 = vpop.f32.mrb[29].mxu1 }
0x15f2   :  { %v1477_v50 = vpop.f32.mrb[30].mxu1 }
0x15f3   :  { %v1481_v5 = vpack.c.bf16 %v1477_v50, %v1474_v2  ;;  %v2600_v6 = vpop.f32.mrb[31].mxu1 }
0x15f5   :  { %2604 = vmatmul.mubr.msk.bf16.vlgmr.msra.gmra.mrb[52].mxu0 %vm218_vm5, %v1481_v5 }
0x15f6   :  { %2614 = vmatpush3.bf16.xpose.msra.mxu0 %v1584_v7  ;;  %2615 = vmatprep.mubr.msk.bf16.mxu0 %vm2943_vm1, %v2942_v0 }
0x15f7   :  { %2625 = vmatprep.subr.bf16.mxu0 %v2942_v0 }
0x15f8   :  { %v1569_v53 = vpop.f32.mrb[32].mxu1 }
0x15f9   :  { %v2611_v8 = vpop.f32.mrb[33].mxu1 }
0x15fa   :  { %v1572_v9 = vpop.f32.mrb[34].mxu1 }
0x15fb   :  { %v2612_v10 = vpop.f32.mrb[35].mxu1 }
0x15fd   :  { %2616 = vmatmul.mubr.msk.bf16.vlgmr.msra.gmra.mrb[56].mxu0 %vm218_vm5, %v1577_v11 }
0x15fe   :  { %2627 = vmatprep.mubr.msk.bf16.mxu0 %vm2943_vm1, %v2942_v0  ;;  %2626 = vmatpush3.bf16.msra.mxu0 %v1702_v54 }
0x15ff   :  { %2637 = vmatprep.subr.bf16.mxu0 %v2942_v0 }
0x16c8   :  { %v1522_v12 = vpop.f32.mrb[52].mxu0 }
0x16c9   :  { %v3280_v13 = vadd.f32 %v1569_v53, %v1522_v12  ;;  %v2605_v14 = vpop.f32.mrb[53].mxu0 }
0x16ca   :  { %v1525_v17 = vpop.f32.mrb[54].mxu0 }
0x16cb   :  { %v3282_v18 = vadd.f32 %v1572_v9, %v1525_v17  ;;  %v2606_v19 = vpop.f32.mrb[55].mxu0  ;;  %v1237_v17 = vld [vmem:[#allocation7 + $0x94] sm:$0xf] }
0x16cc   :  { %v1873_v19 = vsel %vm463_vm7, %v1237_v17, 0 }
0x16d0   :  { %v1620_v20 = vpop.f32.mrb[56].mxu0 }
0x16d1   :  { %v1621_v22 = vadd.f32 %v2814_v21, %v1620_v20  ;;  %v2617_v23 = vpop.f32.mrb[57].mxu0 }
0x16d2   :  { %v1623_v24 = vpop.f32.mrb[58].mxu0 }
0x16d3   :  { %v1624_v27 = vadd.f32 %v2815_v25, %v1623_v24  ;;  %v2618_v28 = vpop.f32.mrb[59].mxu0  ;;  %v1627_v29 = vsel %vm266_vm6, %v1621_v22, -inf }
0x16d4   :  { %1628 = vmax.xlane.f32.xlu1 %v1627_v29 }
0x16d5   :  { %v1630_v30 = vsel %vm266_vm6, %v1624_v27, -inf }
0x16d6   :  { %1631 = vmax.xlane.f32.xlu0 %v1630_v30 }
0x1761   :  { %v1629_v31 = vpop.xlane.xlu1 %1628 }
0x1762   :  { %v1633_v33 = vsub.f32 %v1621_v22, %v1629_v31 }
0x1763   :  { %v1632_v15 = vpop.xlane.xlu0 %1631 }
0x1764   :  { %v1635_v35 = vmul.f32 1.442695, %v1633_v33  ;;  %v1634_v16 = vsub.f32 %v1624_v27, %v1632_v15 }
0x1766   :  { %2790 = vpow2.f32 %v1635_v35  ;;  %v1637_v36 = vmul.f32 1.442695, %v1634_v16 }
0x1768   :  { %2792 = vpow2.f32 %v1637_v36 }
0x1770   :  { %v2791_v37 = vpop.eup %2790 }
0x1771   :  { %v1639_v38 = vsel %vm266_vm6, %v2791_v37, 0.0 }
0x1772   :  { %v2793_v39 = vpop.eup %2792  ;;  %1640 = vadd.xlane.f32.xlu1 %v1639_v38  ;;  %v2350_v38 = vld [vmem:[#allocation8 + $0x50] ss:$0 sm:$0xff] }
0x1773   :  { %v1642_v40 = vsel %vm266_vm6, %v2793_v39, 0.0 }
0x1774   :  { %1643 = vadd.xlane.f32.xlu0 %v1642_v40 }
0x1783   :  { %1650 = vrot.lane.b32.xlu1 %v3218_v58, %s2952_s17 }
0x1787   :  { %1747 = vrot.lane.b32.xlu1 %v3218_v58, %s2953_s19 }
0x178a   :  { %1749 = vrot.lane.b32.xlu0 %v3218_v58, %s2951_s16 }
0x17ff   :  { %v1641_v41 = vpop.xlane.xlu1 %1640 }
0x1800   :  { %2794 = vrcp.f32 %v1641_v41 }
0x1801   :  { %v1644_v42 = vpop.xlane.xlu0 %1643 }
0x1802   :  { %2796 = vrcp.f32 %v1644_v42 }
0x1803   :  { %v1651_v43 = vpop.permute.xlu1 %1650 }
0x1804   :  { %2620 = vmatpush3.bf16.msra.mxu1 %v1651_v43 }
0x1805   :  { %2631 = vmatprep.subr.bf16.mxu1 %v2942_v0  ;;  %v1750_v34 = vpop.permute.xlu0 %1749 }
0x1806   :  { %v1755_v51 = vsel %vm218_vm5, %v1750_v34, 0 }
0x1807   :  { %v1748_v52 = vpop.permute.xlu1 %1747 }
0x180a   :  { %v2795_v44 = vpop.eup %2794 }
0x180b   :  { %v1647_v32 = vmul.f32 %v2795_v44, %v2791_v37 }
0x180c   :  { %v2797_v45 = vpop.eup %2796 }
0x180d   :  { %v1648_v46 = vmul.f32 %v2797_v45, %v2793_v39 }
0x180f   :  { %v1649_v49 = vpack.c.bf16 %v1648_v46, %v1647_v32 }
0x1811   :  { %2622 = vmatmul.mubr.msk.bf16.vlgmr.msra.gmra.mrb[36].mxu1 %vm266_vm6, %v1649_v49 }
0x1812   :  { %2632 = vmatpush3.bf16.xpose.msra.mxu1 %v1755_v51  ;;  %2633 = vmatprep.mubr.msk.bf16.mxu1 %vm2943_vm1, %v2942_v0 }
0x1813   :  { %2643 = vmatprep.subr.bf16.mxu1 %v2942_v0 }
0x1819   :  { %2634 = vmatmul.mubr.msk.bf16.vlgmr.msra.gmra.mrb[40].mxu1 %vm218_vm5, %v1748_v52 }
0x181a   :  { %2645 = vmatprep.mubr.msk.bf16.mxu1 %vm2943_vm1, %v2942_v0  ;;  %2644 = vmatpush3.bf16.msra.mxu1 %v1873_v19  ;;  %v2352_v19 = vld [vmem:[#allocation8 + $0x60] ss:$0 sm:$0xff] }
0x181b   :  { %2657 = vmatprep.subr.bf16.mxu1 %v2942_v0 }
0x18e4   :  { %v1690_v55 = vpop.f32.mrb[36].mxu1 }
0x18e5   :  { %v2623_v56 = vpop.f32.mrb[37].mxu1 }
0x18e6   :  { %v1693_v57 = vpop.f32.mrb[38].mxu1 }
0x18e7   :  { %v1697_v59 = vpack.c.bf16 %v1693_v57, %v1690_v55  ;;  %v2624_v60 = vpop.f32.mrb[39].mxu1 }
0x18e9   :  { %2628 = vmatmul.mubr.msk.bf16.vlgmr.msra.gmra.mrb[60].mxu0 %vm218_vm5, %v1697_v59 }
0x18ea   :  { %2639 = vmatprep.mubr.msk.bf16.mxu0 %vm2943_vm1, %v2942_v0 }
0x18ec   :  { %v1791_v61 = vpop.f32.mrb[40].mxu1 }
0x18ed   :  { %v1792_v62 = vadd.f32 %v2814_v21, %v1791_v61  ;;  %v2635_v63 = vpop.f32.mrb[41].mxu1  ;;  %v2722_v61 = vld [vmem:[#allocation7 + $0x98] sm:$0xff]  }
0x18ee   :  { %v1794_v1 = vpop.f32.mrb[42].mxu1  ;;  %v2725_v63 = vld [vmem:[#allocation7 + $0xb0] sm:$0xff]  }
0x18ef   :  { %v1795_v2 = vadd.f32 %v2815_v25, %v1794_v1  ;;  %v2636_v3 = vpop.f32.mrb[43].mxu1  ;;  %v1798_v4 = vsel %vm266_vm6, %v1792_v62, -inf  ;;  %v2726_v1 = vld [vmem:[#allocation7 + $0xb8] sm:$0xff]  }
0x18f0   :  { %1799 = vmax.xlane.f32.xlu1 %v1798_v4  ;;  %v2728_v3 = vld [vmem:[#allocation7 + $0xc8] sm:$0xff]   ;;  %v2729_v4 = vld [vmem:[#allocation7 + $0xd0] sm:$0xff]  }
0x18f1   :  { %v1801_v50 = vsel %vm266_vm6, %v1795_v2, -inf }
0x18f2   :  { %1802 = vmax.xlane.f32.xlu0 %v1801_v50 }
0x197d   :  { %v1800_v5 = vpop.xlane.xlu1 %1799 }
0x197e   :  { %v1804_v6 = vsub.f32 %v1792_v62, %v1800_v5  ;;  %v2724_v62 = vld [vmem:[#allocation7 + $0xa8] sm:$0xff]  }
0x197f   :  { %v1803_v7 = vpop.xlane.xlu0 %1802 }
0x1980   :  { %v1806_v53 = vmul.f32 1.442695, %v1804_v6  ;;  %v1805_v8 = vsub.f32 %v1795_v2, %v1803_v7  ;;  %v2727_v2 = vld [vmem:[#allocation7 + $0xc0] sm:$0xff]  }
0x1982   :  { %2798 = vpow2.f32 %v1806_v53  ;;  %v1808_v9 = vmul.f32 1.442695, %v1805_v8 }
0x1984   :  { %2800 = vpow2.f32 %v1808_v9 }
0x198c   :  { %v2799_v10 = vpop.eup %2798 }
0x198d   :  { %v1810_v11 = vsel %vm266_vm6, %v2799_v10, 0.0 }
0x198e   :  { %v2801_v12 = vpop.eup %2800  ;;  %1811 = vadd.xlane.f32.xlu0 %v1810_v11  ;;  %v2351_v11 = vld [vmem:[#allocation8 + $0x58] ss:$0 sm:$0xff] }
0x198f   :  { %v1813_v14 = vsel %vm266_vm6, %v2801_v12, 0.0 }
0x1990   :  { %1814 = vadd.xlane.f32.xlu1 %v1813_v14 }
0x19a4   :  { %1821 = vrot.lane.b32.xlu0 %v3218_v58, %s2954_s20 }
0x19bc   :  { %v1738_v20 = vpop.f32.mrb[60].mxu0 }
0x19bd   :  { %v1745_v21 = vadd.f32 %v1738_v20, %v3280_v13  ;;  %v2629_v22 = vpop.f32.mrb[61].mxu0 }
0x19be   :  { %v1741_v23 = vpop.f32.mrb[62].mxu0 }
0x19bf   :  { %v1746_v24 = vadd.f32 %v1741_v23, %v3282_v18  ;;  %v2630_v25 = vpop.f32.mrb[63].mxu0 }
0x19c0   :  { %v2731_v25 = vld [vmem:[#allocation7 + $0xe0] sm:$0xff]  }
0x1a1b   :  { %v1812_v27 = vpop.xlane.xlu0 %1811 }
0x1a1c   :  { %2802 = vrcp.f32 %v1812_v27  ;;  %v2353_v27 = vld [vmem:[#allocation8 + $0x68] ss:$0 sm:$0xff] }
0x1a1d   :  { %v1815_v28 = vpop.xlane.xlu1 %1814 }
0x1a1e   :  { %2804 = vrcp.f32 %v1815_v28 }
0x1a1f   :  { %v1822_v29 = vpop.permute.xlu0 %1821 }
0x1a20   :  { %2638 = vmatpush3.bf16.msra.mxu0 %v1822_v29 }
0x1a21   :  { %2649 = vmatprep.subr.bf16.mxu0 %v2942_v0 }
0x1a26   :  { %v2803_v58 = vpop.eup %2802 }
0x1a27   :  { %v1818_v31 = vmul.f32 %v2803_v58, %v2799_v10 }
0x1a28   :  { %v2805_v30 = vpop.eup %2804 }
0x1a29   :  { %v1819_v33 = vmul.f32 %v2805_v30, %v2801_v12 }
0x1a2b   :  { %v1820_v15 = vpack.c.bf16 %v1819_v33, %v1818_v31 }
0x1a2d   :  { %2640 = vmatmul.mubr.msk.bf16.vlgmr.msra.gmra.mrb[64].mxu0 %vm266_vm6, %v1820_v15 }
0x1a2e   :  { %2653 = vmatprep.mubr.msk.bf16.mxu0 %vm2943_vm1, %v2942_v0  ;;  %2650 = vmatpush3.bf16.msra.mxu0 %v2722_v61 }
0x1a2f   :  { %2651 = vmatprep.subr.bf16.mxu0 %v2942_v0 }
0x1b00   :  { %v1861_v13 = vpop.f32.mrb[64].mxu0 }
0x1b01   :  { %v2641_v18 = vpop.f32.mrb[65].mxu0 }
0x1b02   :  { %v1864_v35 = vpop.f32.mrb[66].mxu0 }
0x1b03   :  { %v1868_v16 = vpack.c.bf16 %v1864_v35, %v1861_v13  ;;  %v2642_v36 = vpop.f32.mrb[67].mxu0  ;;  %v2357_v35 = vld [vmem:[#allocation8 + $0x70] ss:$0 sm:$0xff] }
0x1b05   :  { %2646 = vmatmul.mubr.msk.bf16.vlgmr.msra.gmra.mrb[44].mxu1 %vm218_vm5, %v1868_v16 }
0x1b06   :  { %2673 = vmatprep.mubr.msk.bf16.mxu1 %vm2943_vm1, %v2942_v0  ;;  %2658 = vmatpush3.bf16.msra.mxu1 %v2724_v62 }
0x1b07   :  { %2659 = vmatprep.subr.bf16.mxu1 %v2942_v0 }
0x1b0a   :  { %2660 = vmatpush3.bf16.msra.mxu1 %v2725_v63 }
0x1b0b   :  { %2661 = vmatprep.subr.bf16.mxu1 %v2942_v0 }
0x1b0e   :  { %2662 = vmatpush3.bf16.msra.mxu1 %v2726_v1  ;;  %v2366_v1 = vld [vmem:[#allocation8 + $0x78] ss:$0 sm:$0xff] }
0x1b0f   :  { %2663 = vmatprep.subr.bf16.mxu1 %v2942_v0 }
0x1b12   :  { %2664 = vmatpush3.bf16.msra.mxu1 %v2727_v2 }
0x1b13   :  { %2665 = vmatprep.subr.bf16.mxu1 %v2942_v0 }
0x1b16   :  { %2666 = vmatpush3.bf16.msra.mxu1 %v2728_v3  ;;  %v2367_v3 = vld [vmem:[#allocation8 + $0x80] ss:$0 sm:$0xff] }
0x1b17   :  { %2667 = vmatprep.subr.bf16.mxu1 %v2942_v0 }
0x1b1a   :  { %2668 = vmatpush3.bf16.msra.mxu1 %v2729_v4 }
0x1b1b   :  { %2669 = vmatprep.subr.bf16.mxu1 %v2942_v0 }
0x1bd8   :  { %v1909_v37 = vpop.f32.mrb[44].mxu1 }
0x1bd9   :  { %v1916_v39 = vadd.f32 %v1909_v37, %v1745_v21  ;;  %v2647_v40 = vpop.f32.mrb[45].mxu1 }
0x1bda   :  { %v1912_v41 = vpop.f32.mrb[46].mxu1 }
0x1bdb   :  { %v1923_v42 = vadd.f32 %v2350_v38, %v1916_v39  ;;  %v1917_v43 = vadd.f32 %v1912_v41, %v1746_v24  ;;  %v2648_v44 = vpop.f32.mrb[47].mxu1  ;;  %v2730_v24 = vld [vmem:[#allocation7 + $0xd8] sm:$0xff]  }
0x1bdc   :  { %2670 = vmatpush3.bf16.msra.mxu1 %v2730_v24 }
0x1bdd   :  { %v1924_v45 = vadd.f32 %v2350_v38, %v1917_v43  ;;  %v1925_v32 = vadd.f32 %v1923_v42, %v3209_v47  ;;  %2671 = vmatprep.subr.bf16.mxu1 %v2942_v0 }
0x1bdf   :  { %v1929_v46 = vsel %vm165_vm4, %v1925_v32, 0.0  ;;  %v1926_v34 = vadd.f32 %v1924_v45, %v3211_v48  ;;  %v2723_v48 = vld [vmem:[#allocation7 + $0xa0] sm:$0xff]  }
0x1be0   :  { %1930 = vadd.xlane.f32.xlu1 %v1929_v46  ;;  %2652 = vmatpush3.bf16.msra.mxu0 %v2723_v48 }
0x1be1   :  { %v1932_v49 = vsel %vm165_vm4, %v1926_v34, 0.0  ;;  %2677 = vmatprep.subr.bf16.mxu0 %v2942_v0  ;;  %2672 = vmatpush3.bf16.msra.mxu1 %v2731_v25 }
0x1be4   :  { %1933 = vadd.xlane.f32.xlu1 %v1932_v49 }
0x1c6d   :  { %v1931_v51 = vpop.xlane.xlu1 %1930 }
0x1c6e   :  { %v1935_v52 = vmul.f32 0.03125, %v1931_v51 }
0x1c70   :  { %v1937_v26 = vsub.f32 %v1925_v32, %v1935_v52 }
0x1c71   :  { %v1934_v54 = vpop.xlane.xlu1 %1933 }
0x1c72   :  { %v1936_v55 = vmul.f32 0.03125, %v1934_v54  ;;  %v1939_v56 = vmul.f32 %v1937_v26, %v1937_v26 }
0x1c74   :  { %v1938_v57 = vsub.f32 %v1926_v34, %v1936_v55  ;;  %v1941_v59 = vsel %vm165_vm4, %v1939_v56, 0.0  ;;  %v2732_v56 = vld [vmem:[#allocation7 + $0xe8] sm:$0xff]  }
0x1c75   :  { %1942 = vadd.xlane.f32.xlu1 %v1941_v59 }
0x1c76   :  { %v1940_v60 = vmul.f32 %v1938_v57, %v1938_v57 }
0x1c78   :  { %v1944_v47 = vsel %vm165_vm4, %v1940_v60, 0.0 }
0x1c79   :  { %1945 = vadd.xlane.f32.xlu1 %v1944_v47 }
0x1d02   :  { %v1943_v50 = vpop.xlane.xlu1 %1942 }
0x1d03   :  { %v1947_v5 = vmul.f32 0.03125, %v1943_v50 }
0x1d05   :  { %v1949_v6 = vadd.f32 1e-05, %v1947_v5 }
0x1d06   :  { %v1946_v7 = vpop.xlane.xlu1 %1945 }
0x1d07   :  { %2806 = vrsqrt.f32 %v1949_v6  ;;  %v1948_v53 = vmul.f32 0.03125, %v1946_v7 }
0x1d09   :  { %v1950_v8 = vadd.f32 1e-05, %v1948_v53 }
0x1d0b   :  { %2808 = vrsqrt.f32 %v1950_v8 }
0x1d11   :  { %v2807_v9 = vpop.eup %2806 }
0x1d12   :  { %v1953_v10 = vmul.f32 %v2807_v9, %v1937_v26 }
0x1d14   :  { %v1959_v14 = vmul.f32 %v2351_v11, %v1953_v10 }
0x1d15   :  { %v2809_v12 = vpop.eup %2808 }
0x1d16   :  { %v1954_v17 = vmul.f32 %v2809_v12, %v1938_v57  ;;  %v1965_v21 = vadd.f32 %v2352_v19, %v1959_v14  ;;  %v2733_v57 = vld [vmem:[#allocation7 + $0xf0] sm:$0xff]  }
0x1d18   :  { %v1960_v20 = vmul.f32 %v2351_v11, %v1954_v17 }
0x1d1a   :  { %v1966_v22 = vadd.f32 %v2352_v19, %v1960_v20 }
0x1d1c   :  { %v1971_v23 = vpack.c.bf16 %v1966_v22, %v1965_v21 }
0x1d1e   :  { %2654 = vmatmul.mubr.msk.bf16.vlgmr.msra.gmra.mrb[68].mxu0 %vm165_vm4, %v1971_v23 }
0x1d1f   :  { %2681 = vmatprep.mubr.msk.bf16.mxu0 %vm2943_vm1, %v2942_v0  ;;  %2678 = vmatpush3.bf16.msra.mxu0 %v2732_v56 }
0x1d20   :  { %2679 = vmatprep.subr.bf16.mxu0 %v2942_v0 }
0x1d23   :  { %2680 = vmatpush3.bf16.msra.mxu0 %v2733_v57 }
0x1df1   :  { %v2026_v28 = vpop.f32.mrb[68].mxu0 }
0x1df2   :  { %v2027_v29 = vadd.f32 %v2353_v27, %v2026_v28  ;;  %v2655_v58 = vpop.f32.mrb[69].mxu0 }
0x1df3   :  { %v2029_v30 = vpop.f32.mrb[70].mxu0 }
0x1df4   :  { %v2030_v31 = vadd.f32 %v2353_v27, %v2029_v30  ;;  %v2656_v33 = vpop.f32.mrb[71].mxu0  ;;  %v2033_v15 = vmax.f32 %v2027_v29, 0.0 }
0x1df6   :  { %v2034_v13 = vmax.f32 %v2030_v31, 0.0 }
0x1df8   :  { %v2051_v18 = vpack.c.bf16 %v2034_v13, %v2033_v15  ;;  %v2368_v15 = vld [vmem:[#allocation8 + $0x88] ss:$0 sm:$0xff] }
0x1dfa   :  { %2674 = vmatmul.mubr.bf16.vlgmr.msra.gmra.mrb[48].mxu1 %v2051_v18 }
0x1ecd   :  { %v2139_v16 = vpop.f32.mrb[48].mxu1 }
0x1ece   :  { %v2140_v36 = vadd.f32 %v2357_v35, %v2139_v16  ;;  %v2675_v37 = vpop.f32.mrb[49].mxu1 }
0x1ecf   :  { %v2142_v38 = vpop.f32.mrb[50].mxu1 }
0x1ed0   :  { %v2143_v39 = vadd.f32 %v2357_v35, %v2142_v38  ;;  %v2676_v40 = vpop.f32.mrb[51].mxu1  ;;  %v2146_v41 = vadd.f32 %v2140_v36, %v1965_v21 }
0x1ed2   :  { %v2150_v42 = vsel %vm165_vm4, %v2146_v41, 0.0  ;;  %v2147_v43 = vadd.f32 %v2143_v39, %v1966_v22 }
0x1ed3   :  { %2151 = vadd.xlane.f32.xlu1 %v2150_v42 }
0x1ed4   :  { %v2153_v44 = vsel %vm165_vm4, %v2147_v43, 0.0 }
0x1ed7   :  { %2154 = vadd.xlane.f32.xlu1 %v2153_v44 }
0x1f60   :  { %v2152_v45 = vpop.xlane.xlu1 %2151 }
0x1f61   :  { %v2156_v32 = vmul.f32 0.03125, %v2152_v45 }
0x1f63   :  { %v2158_v46 = vsub.f32 %v2146_v41, %v2156_v32 }
0x1f64   :  { %v2155_v34 = vpop.xlane.xlu1 %2154 }
0x1f65   :  { %v2157_v49 = vmul.f32 0.03125, %v2155_v34  ;;  %v2160_v51 = vmul.f32 %v2158_v46, %v2158_v46 }
0x1f67   :  { %v2159_v52 = vsub.f32 %v2147_v43, %v2157_v49  ;;  %v2162_v26 = vsel %vm165_vm4, %v2160_v51, 0.0 }
0x1f68   :  { %2163 = vadd.xlane.f32.xlu0 %v2162_v26 }
0x1f69   :  { %v2161_v54 = vmul.f32 %v2159_v52, %v2159_v52 }
0x1f6b   :  { %v2165_v55 = vsel %vm165_vm4, %v2161_v54, 0.0 }
0x1f6c   :  { %2166 = vadd.xlane.f32.xlu1 %v2165_v55 }
0x1ff5   :  { %v2164_v59 = vpop.xlane.xlu0 %2163 }
0x1ff6   :  { %v2168_v60 = vmul.f32 0.03125, %v2164_v59 }
0x1ff8   :  { %v2170_v47 = vadd.f32 1e-05, %v2168_v60 }
0x1ff9   :  { %v2167_v61 = vpop.xlane.xlu1 %2166 }
0x1ffa   :  { %2810 = vrsqrt.f32 %v2170_v47  ;;  %v2169_v48 = vmul.f32 0.03125, %v2167_v61 }
0x1ffc   :  { %v2171_v62 = vadd.f32 1e-05, %v2169_v48 }
0x1ffe   :  { %2812 = vrsqrt.f32 %v2171_v62 }
0x2004   :  { %v2811_v63 = vpop.eup %2810 }
0x2005   :  { %v2174_v2 = vmul.f32 %v2811_v63, %v2158_v46 }
0x2007   :  { %v2180_v4 = vmul.f32 %v2366_v1, %v2174_v2 }
0x2008   :  { %v2813_v50 = vpop.eup %2812 }
0x2009   :  { %v2186_v5 = vadd.f32 %v2367_v3, %v2180_v4  ;;  %v2175_v6 = vmul.f32 %v2813_v50, %v2159_v52 }
0x200b   :  { %v2188_v7 = vsel %vm165_vm4, %v2186_v5, 0.0  ;;  %v2181_v0 = vmul.f32 %v2366_v1, %v2175_v6 }
0x200c   :  { %v2189_v53 = vrot.slane %v2188_v7, 4 }
0x200d   :  { %v2187_v8 = vadd.f32 %v2367_v3, %v2181_v0 }
0x200e   :  { %v2190_v9 = vadd.f32 %v2189_v53, %v2188_v7 }
0x200f   :  { %v2195_v10 = vsel %vm165_vm4, %v2187_v8, 0.0 }
0x2010   :  { %v2191_v11 = vrot.slane %v2190_v9, 2  ;;  %v2196_v12 = vrot.slane %v2195_v10, 4 }
0x2012   :  { %v2197_v14 = vadd.f32 %v2196_v12, %v2195_v10  ;;  %v2192_v17 = vadd.f32 %v2191_v11, %v2190_v9 }
0x2014   :  { %v2198_v19 = vrot.slane %v2197_v14, 2  ;;  %v2193_v20 = vrot.slane %v2192_v17, 1 }
0x2016   :  { %v2194_v21 = vadd.f32 %v2193_v20, %v2192_v17  ;;  %v2199_v22 = vadd.f32 %v2198_v19, %v2197_v14 }
0x2018   :  { %v2200_v23 = vrot.slane %v2199_v22, 1  ;;  %v2203_v24 = vmul.f32 0.125, %v2194_v21 }
0x201a   :  { %v2201_v25 = vadd.f32 %v2200_v23, %v2199_v22  ;;  %v2209_v28 = vpack.c.bf16 %v2203_v24, %v2203_v24 }
0x201c   :  { %v2204_v27 = vmul.f32 0.125, %v2201_v25  ;;  %v2218_v58 = vunpack.c.l.b16 %v2209_v28 }
0x201e   :  { %v2210_v29 = vpack.c.bf16 %v2204_v27, %v2204_v27 }
0x2020   :  { %v2219_v30 = vunpack.c.l.b16 %v2210_v29 }
0x2022   :  { %v2221_v31 = vsel %vm2220_vm8, %v2219_v30, %v2218_v58 }
0x2023   :  { %v2222_v33 = vpack.c.b16 %v2221_v31, %v2221_v31 }
0x2025   :  { %2682 = vmatmul.mubr.msk.bf16.vlgmr.msra.gmra.mrb[72].mxu0 %vm165_vm4, %v2222_v33 }
0x20f8   :  { %v2272_v13 = vpop.f32.mrb[72].mxu0 }
0x20f9   :  { %v2273_v18 = vadd.f32 %v2368_v15, %v2272_v13  ;;  %v2683_v35 = vpop.f32.mrb[73].mxu0 }
0x20fa   :  { %v2275_v16 = vpop.f32.mrb[74].mxu0 }
0x20fb   :  { %v2684_v36 = vpop.f32.mrb[75].mxu0  ;;  %2279 = vst.msk [vmem:[#allocation10] sm:$0x3] %vm2278_vm9, %v2273_v18 }
0x20fc   :  { %2915 = shalt.err (!%p2912_p8)
}
0x20fd   :  { %s2916_s18 = scalar_lea.hbm %s3367_s4, 32 }
0x20fe   :  { %p2917_p9 = scmp.ne.s32.totalorder %s3367_s4, %s2916_s18  ;;  %p2920_p10 = scmp.lt.u32.totalorder %s2916_s18, %s3367_s4 }
0x2100   :  { %p2922_p11 = pnand %p2920_p10, %p2917_p9 }
0x2102   :  { %2925 = shalt.err (!%p2922_p11)
}
0x2103   :  { %2289 = dma.vmem_to_hbm [thread:$0]  %s2287_s22, 32, %s3367_s4, [#allocation4]  }
0x2104   :  { %2932 = dma.done.wait [#allocation4], 32  }
0x2105   :  { %2933 = vsyncadd [#allocation4], 4294967264 }
0x2106   :  { %2293 = vsyncpa [#allocation3], 1 }
0x2107   :  { %2294 = vsyncpa [#allocation6], 1 }
0x2108   :  { %2295 = vsyncpa [#allocation9], 1 }
0x2109   :  { %2296 = vsyncpa [#allocation4], 1 }

</bundles_post_ra>
